<compile_context>
chip_gen: v7x
topology: tpu7x:2x2x1
jax: 0.10.0
libtpu: 0.0.40
codegen_flags: <defaults>
</compile_context>

<pallas_src>
import jax
import jax.numpy as jnp
from jax.experimental import pallas as pl
from jax.experimental.pallas import tpu as pltpu


# ----------------------------------------------------------------------------
# Fused kernel: GRU over [state; state_] stacked on batch, then both heads.
#   PyTorch GRU gate order [r, z, n] (biases b_hr/b_hz pre-folded into b_ih):
#     r = sigmoid(x W_ir + h W_hr + b_r)
#     z = sigmoid(x W_iz + h W_hz + b_z)
#     n = tanh   (x W_in + b_in + r * (h W_hn + b_hn))
#     h = (1 - z) * n + z * h_prev
#   Heads (merged):
#     head_all = h_all @ [W_fwd_h | W_inv_a | W_inv_b]
#     new_state = head_all[:B, :H] + action * W_fwd_a + b_fwd
#     pi        = head_all[:B, H:H+A] + head_all[B:, H+A:] + b_inv
# ----------------------------------------------------------------------------
def icm_kernel(x_ref, act_ref,
               wih_ref, whh_ref, bih_ref, bhn_ref,
               wall_ref, bfwd_ref, binv_ref, wfwda_ref,
               out_ref):
    nb, t_len, d = x_ref.shape          # nb = 2B
    b = nb // 2
    h_dim = whh_ref.shape[0]
    gp = whh_ref.shape[1] // 3          # lane-aligned gate pitch (>= h_dim)
    n_act = binv_ref.shape[1]

    # Hoisted input projection for all timesteps of both sequences (f32, off
    # the recurrence's critical path).  b_ih already has b_hr/b_hz folded in.
    x2d = x_ref[...].reshape(nb * t_len, d)
    gi_all = (jnp.dot(x2d, wih_ref[...], preferred_element_type=jnp.float32)
              + bih_ref[...]).reshape(nb, t_len, 3 * gp)

    # Loop-invariant hoists: bf16 cast of W_hh (MXU operand) and the single
    # b_hn broadcast (JAX does not CSE broadcast_in_dim).
    whh_bf = whh_ref[...].astype(jnp.bfloat16)
    bhn_b = jnp.broadcast_to(bhn_ref[...], (nb, h_dim))

    # GRU recurrence, fully unrolled (T is static and small).  Only the bf16
    # h @ W_hh matmul and the gate elementwise math sit on the serial chain.
    h = jnp.zeros((nb, h_dim), jnp.float32)
    for t in range(t_len):
        gi = gi_all[:, t, :]                                    # (2B, 3*gp)
        gh = jnp.dot(h.astype(jnp.bfloat16), whh_bf,
                     preferred_element_type=jnp.float32)        # f32 accum
        # Gate blocks start at lane offsets 0, gp, 2*gp (multiples of 128).
        r = jax.nn.sigmoid(gi[:, 0:h_dim] + gh[:, 0:h_dim])
        z = jax.nn.sigmoid(gi[:, gp:gp + h_dim] + gh[:, gp:gp + h_dim])
        n = jnp.tanh(gi[:, 2 * gp:2 * gp + h_dim]
                     + r * (gh[:, 2 * gp:2 * gp + h_dim] + bhn_b))
        h = (1.0 - z) * n + z * h

    # Epilogue: ONE merged head matmul on the still-stacked h.
    #   W_all = [W_fwd_h | W_inv_a | W_inv_b]  (H, H + 2*n_act)
    head_all = jnp.dot(h.astype(jnp.bfloat16),
                       wall_ref[...].astype(jnp.bfloat16),
                       preferred_element_type=jnp.float32)      # (2B, H+2A)

    h_tp1 = h[b:]                                               # (B, H)
    new_state = (head_all[:b, :h_dim]
                 + act_ref[...] * wfwda_ref[...] + bfwd_ref[...])
    pi = (head_all[:b, h_dim:h_dim + n_act]
          + head_all[b:, h_dim + n_act:] + binv_ref[...])

    # Lane-dense output slab: [new_state | h_tp1 | pi | zero pad].
    used = 2 * h_dim + n_act
    pad_w = out_ref.shape[1] - used
    pieces = [new_state, h_tp1, pi]
    if pad_w > 0:
        pieces.append(jnp.zeros((b, pad_w), jnp.float32))
    out_ref[...] = jnp.concatenate(pieces, axis=1)


# ----------------------------------------------------------------------------
# Wrapper: one pallas_call, no grid, full-array VMEM blocks.
# ----------------------------------------------------------------------------
def icm_forward(kp, state, state_, action):
    b = state.shape[0]
    h_dim = kp["w_hh_p"].shape[0]
    n_act = kp["binv"].shape[1]
    used = 2 * h_dim + n_act
    slab_w = ((used + 127) // 128) * 128

    # Pre-stack the two sequences on the batch axis (removes the in-kernel
    # concat/relayout of the unaligned raw inputs).
    x = jnp.concatenate([state, state_], axis=0)                # (2B, T, D)
    act_col = action.reshape(b, 1).astype(jnp.float32)
    vmem = pl.BlockSpec(memory_space=pltpu.MemorySpace.VMEM)

    slab = pl.pallas_call(
        icm_kernel,
        out_shape=jax.ShapeDtypeStruct((b, slab_w), jnp.float32),
        in_specs=[vmem] * 10,
        out_specs=vmem,
    )(x, act_col,
      kp["w_ih_p"], kp["w_hh_p"], kp["b_ih_p"], kp["b_hn"],
      kp["w_all"], kp["bfwd"], kp["binv"], kp["wfwd_a"])

    new_state = slab[:, :h_dim]
    h_tp1 = slab[:, h_dim:2 * h_dim]
    pi_logits = slab[:, 2 * h_dim:used]
    return pi_logits, new_state, h_tp1


def prepare_kernel_params(p):
    """One-time (offline) weight packing for the fused kernel."""
    d = p["w_ih_t"].shape[0]
    h_dim = p["w_hh_t"].shape[0]
    gp = ((h_dim + 127) // 128) * 128          # lane-aligned gate pitch

    def pack_gates(w, rows):
        out = jnp.zeros((rows, 3 * gp), w.dtype)
        for g in range(3):
            out = out.at[:, g * gp:g * gp + h_dim].set(
                w[:, g * h_dim:(g + 1) * h_dim])
        return out

    # Fold b_hr / b_hz into the input bias (b_hn must stay inside r * (...)).
    b_folded = p["b_ih"] + jnp.concatenate(
        [p["b_hh"][:, :2 * h_dim],
         jnp.zeros((1, h_dim), p["b_hh"].dtype)], axis=1)

    return {
        "w_ih_p": pack_gates(p["w_ih_t"], d),        # (D, 3*gp)
        "w_hh_p": pack_gates(p["w_hh_t"], h_dim),    # (H, 3*gp)
        "b_ih_p": pack_gates(b_folded, 1),           # (1, 3*gp)
        "b_hn": p["b_hh"][:, 2 * h_dim:],            # (1, H)
        # Merged epilogue head consumed by the stacked h:
        #   h_t -> [W_fwd_h | W_inv_a],  h_tp1 -> [W_inv_b]
        "w_all": jnp.concatenate([p["wfwd_h"], p["winv_a"], p["winv_b"]],
                                 axis=1),            # (H, H + 2*n_act)
        "bfwd": p["bfwd"],
        "binv": p["binv"],
        "wfwd_a": p["wfwd_a"],
    }


# ----------------------------------------------------------------------------
# Pure-JAX reference (mirrors the PyTorch math) for a correctness check.
# ----------------------------------------------------------------------------
def icm_forward_ref(params, state, state_, action):
    def gru_ref(x_btd):
        h_dim = params["w_hh_t"].shape[0]
        h = jnp.zeros((x_btd.shape[0], h_dim), jnp.float32)
        for t in range(x_btd.shape[1]):
            gi = x_btd[:, t, :] @ params["w_ih_t"] + params["b_ih"]
            gh = h @ params["w_hh_t"] + params["b_hh"]
            r = jax.nn.sigmoid(gi[:, :h_dim] + gh[:, :h_dim])
            z = jax.nn.sigmoid(gi[:, h_dim:2 * h_dim] + gh[:, h_dim:2 * h_dim])
            n = jnp.tanh(gi[:, 2 * h_dim:] + r * gh[:, 2 * h_dim:])
            h = (1.0 - z) * n + z * h
        return h

    h_t, h_tp1 = gru_ref(state), gru_ref(state_)
    pi = h_t @ params["winv_a"] + h_tp1 @ params["winv_b"] + params["binv"]
    ns = h_t @ params["wfwd_h"] + action[:, None] * params["wfwd_a"] + params["bfwd"]
    return pi, ns, h_tp1


if __name__ == "__main__":
    B, T, D = 2, 8, 4          # input_dims = (T, D); GRU input size = D
    H = 32                     # fc_dims
    N_ACT = 3

    key = jax.random.PRNGKey(0)
    ks = jax.random.split(key, 12)
    scale = 0.1

    params = {
        # GRU params (PyTorch stores (3H, D)/(3H, H); kept pre-transposed).
        "w_ih_t": scale * jax.random.normal(ks[0], (D, 3 * H), jnp.float32),
        "w_hh_t": scale * jax.random.normal(ks[1], (H, 3 * H), jnp.float32),
        "b_ih": scale * jax.random.normal(ks[2], (1, 3 * H), jnp.float32),
        "b_hh": scale * jax.random.normal(ks[3], (1, 3 * H), jnp.float32),
        # inv_fc: Linear(2H -> n_actions), split into h_t / h_tp1 halves.
        "winv_a": scale * jax.random.normal(ks[4], (H, N_ACT), jnp.float32),
        "winv_b": scale * jax.random.normal(ks[5], (H, N_ACT), jnp.float32),
        "binv": scale * jax.random.normal(ks[6], (1, N_ACT), jnp.float32),
        # fwd_fc: Linear(H + 1 -> H), split into the h_t part and action row.
        "wfwd_h": scale * jax.random.normal(ks[7], (H, H), jnp.float32),
        "wfwd_a": scale * jax.random.normal(ks[8], (1, H), jnp.float32),
        "bfwd": scale * jax.random.normal(ks[9], (1, H), jnp.float32),
    }
    kparams = prepare_kernel_params(params)

    state = jax.random.normal(ks[10], (B, T, D), jnp.float32)
    state_ = jax.random.normal(ks[11], (B, T, D), jnp.float32)
    action = jnp.array([0.0, 2.0], jnp.float32)   # (B,) discrete actions as floats

    fwd = jax.jit(icm_forward)
    pi_logits, new_state, h_tp1 = jax.block_until_ready(
        fwd(kparams, state, state_, action))

    pi_r, ns_r, h_r = icm_forward_ref(params, state, state_, action)
    assert pi_logits.shape == (B, N_ACT)
    assert new_state.shape == (B, H)
    assert h_tp1.shape == (B, H)
    # bf16 MXU operands (f32 accumulation) -> loosened tolerance vs f32 ref.
    assert jnp.allclose(pi_logits, pi_r, atol=2e-2)
    assert jnp.allclose(new_state, ns_r, atol=2e-2)
    assert jnp.allclose(h_tp1, h_r, atol=2e-2)

    print("KERNEL_OK")
</pallas_src>

<mosaic_0001>
module attributes {stable_mosaic.version = 11 : i64} {
  func.func @icm_kernel(%arg0: memref<4x8x4xf32, #tpu.memory_space<vmem>>, %arg1: memref<2x1xf32, #tpu.memory_space<vmem>>, %arg2: memref<4x384xf32, #tpu.memory_space<vmem>>, %arg3: memref<32x384xf32, #tpu.memory_space<vmem>>, %arg4: memref<1x384xf32, #tpu.memory_space<vmem>>, %arg5: memref<1x32xf32, #tpu.memory_space<vmem>>, %arg6: memref<32x38xf32, #tpu.memory_space<vmem>>, %arg7: memref<1x32xf32, #tpu.memory_space<vmem>>, %arg8: memref<1x3xf32, #tpu.memory_space<vmem>>, %arg9: memref<1x32xf32, #tpu.memory_space<vmem>>, %arg10: memref<2x128xf32, #tpu.memory_space<vmem>>) attributes {dimension_semantics = [], scalar_prefetch = 0 : i64, scratch_operands = 0 : i64, tpu.core_type = #tpu.core_type<tc>} {
    %c0 = arith.constant 0 : index
    %c0_0 = arith.constant 0 : index
    %c0_1 = arith.constant 0 : index
    %0 = vector.load %arg0[%c0, %c0_0, %c0_1] : memref<4x8x4xf32, #tpu.memory_space<vmem>>, vector<4x8x4xf32>
    %1 = vector.shape_cast %0 : vector<4x8x4xf32> to vector<32x4xf32>
    %c0_2 = arith.constant 0 : index
    %c0_3 = arith.constant 0 : index
    %2 = vector.load %arg2[%c0_2, %c0_3] : memref<4x384xf32, #tpu.memory_space<vmem>>, vector<4x384xf32>
    %cst = arith.constant dense<0.000000e+00> : vector<32x384xf32>
    %3 = tpu.matmul %1, %2, %cst {dimension_numbers = #tpu.dot_dimension_numbers<[1], [0], [0], [1], [0, 0, 1, 1], [], []>} : vector<32x4xf32>, vector<4x384xf32>, vector<32x384xf32> -> vector<32x384xf32>
    %c0_4 = arith.constant 0 : index
    %c0_5 = arith.constant 0 : index
    %4 = vector.load %arg4[%c0_4, %c0_5] : memref<1x384xf32, #tpu.memory_space<vmem>>, vector<1x384xf32>
    %5 = vector.broadcast %4 : vector<1x384xf32> to vector<32x384xf32>
    %6 = arith.addf %3, %5 : vector<32x384xf32>
    %7 = vector.shape_cast %6 : vector<32x384xf32> to vector<4x8x384xf32>
    %c0_6 = arith.constant 0 : index
    %c0_7 = arith.constant 0 : index
    %8 = vector.load %arg3[%c0_6, %c0_7] : memref<32x384xf32, #tpu.memory_space<vmem>>, vector<32x384xf32>
    %9 = arith.truncf %8 : vector<32x384xf32> to vector<32x384xbf16>
    %c0_8 = arith.constant 0 : index
    %c0_9 = arith.constant 0 : index
    %10 = vector.load %arg5[%c0_8, %c0_9] : memref<1x32xf32, #tpu.memory_space<vmem>>, vector<1x32xf32>
    %11 = vector.shape_cast %10 : vector<1x32xf32> to vector<1x32xf32>
    %12 = vector.broadcast %11 : vector<1x32xf32> to vector<4x32xf32>
    %cst_10 = arith.constant 0.000000e+00 : f32
    %13 = vector.broadcast %cst_10 : f32 to vector<4x32xf32>
    %14 = vector.extract_strided_slice %7 {offsets = [0, 0, 0], sizes = [4, 1, 384], strides = [1, 1, 1]} : vector<4x8x384xf32> to vector<4x1x384xf32>
    %15 = vector.shape_cast %14 : vector<4x1x384xf32> to vector<4x384xf32>
    %16 = arith.truncf %13 : vector<4x32xf32> to vector<4x32xbf16>
    %cst_11 = arith.constant dense<0.000000e+00> : vector<4x384xf32>
    %17 = tpu.matmul %16, %9, %cst_11 {dimension_numbers = #tpu.dot_dimension_numbers<[1], [0], [0], [1], [0, 0, 1, 1], [], []>} : vector<4x32xbf16>, vector<32x384xbf16>, vector<4x384xf32> -> vector<4x384xf32>
    %18 = vector.extract_strided_slice %15 {offsets = [0, 0], sizes = [4, 32], strides = [1, 1]} : vector<4x384xf32> to vector<4x32xf32>
    %19 = vector.extract_strided_slice %17 {offsets = [0, 0], sizes = [4, 32], strides = [1, 1]} : vector<4x384xf32> to vector<4x32xf32>
    %20 = arith.addf %18, %19 : vector<4x32xf32>
    %21 = arith.negf %20 : vector<4x32xf32>
    %22 = math.exp %21 : vector<4x32xf32>
    %cst_12 = arith.constant 1.000000e+00 : f32
    %23 = vector.broadcast %cst_12 : f32 to vector<4x32xf32>
    %24 = arith.addf %23, %22 : vector<4x32xf32>
    %25 = arith.divf %23, %24 : vector<4x32xf32>
    %26 = vector.extract_strided_slice %15 {offsets = [0, 128], sizes = [4, 32], strides = [1, 1]} : vector<4x384xf32> to vector<4x32xf32>
    %27 = vector.extract_strided_slice %17 {offsets = [0, 128], sizes = [4, 32], strides = [1, 1]} : vector<4x384xf32> to vector<4x32xf32>
    %28 = arith.addf %26, %27 : vector<4x32xf32>
    %29 = arith.negf %28 : vector<4x32xf32>
    %30 = math.exp %29 : vector<4x32xf32>
    %cst_13 = arith.constant 1.000000e+00 : f32
    %31 = vector.broadcast %cst_13 : f32 to vector<4x32xf32>
    %32 = arith.addf %31, %30 : vector<4x32xf32>
    %33 = arith.divf %31, %32 : vector<4x32xf32>
    %34 = vector.extract_strided_slice %15 {offsets = [0, 256], sizes = [4, 32], strides = [1, 1]} : vector<4x384xf32> to vector<4x32xf32>
    %35 = vector.extract_strided_slice %17 {offsets = [0, 256], sizes = [4, 32], strides = [1, 1]} : vector<4x384xf32> to vector<4x32xf32>
    %36 = arith.addf %35, %12 : vector<4x32xf32>
    %37 = arith.mulf %25, %36 : vector<4x32xf32>
    %38 = arith.addf %34, %37 : vector<4x32xf32>
    %39 = math.tanh %38 : vector<4x32xf32>
    %cst_14 = arith.constant 1.000000e+00 : f32
    %40 = vector.broadcast %cst_14 : f32 to vector<4x32xf32>
    %41 = arith.subf %40, %33 : vector<4x32xf32>
    %42 = arith.mulf %41, %39 : vector<4x32xf32>
    %43 = arith.mulf %33, %13 : vector<4x32xf32>
    %44 = arith.addf %42, %43 : vector<4x32xf32>
    %45 = vector.extract_strided_slice %7 {offsets = [0, 1, 0], sizes = [4, 1, 384], strides = [1, 1, 1]} : vector<4x8x384xf32> to vector<4x1x384xf32>
    %46 = vector.shape_cast %45 : vector<4x1x384xf32> to vector<4x384xf32>
    %47 = arith.truncf %44 : vector<4x32xf32> to vector<4x32xbf16>
    %cst_15 = arith.constant dense<0.000000e+00> : vector<4x384xf32>
    %48 = tpu.matmul %47, %9, %cst_15 {dimension_numbers = #tpu.dot_dimension_numbers<[1], [0], [0], [1], [0, 0, 1, 1], [], []>} : vector<4x32xbf16>, vector<32x384xbf16>, vector<4x384xf32> -> vector<4x384xf32>
    %49 = vector.extract_strided_slice %46 {offsets = [0, 0], sizes = [4, 32], strides = [1, 1]} : vector<4x384xf32> to vector<4x32xf32>
    %50 = vector.extract_strided_slice %48 {offsets = [0, 0], sizes = [4, 32], strides = [1, 1]} : vector<4x384xf32> to vector<4x32xf32>
    %51 = arith.addf %49, %50 : vector<4x32xf32>
    %52 = arith.negf %51 : vector<4x32xf32>
    %53 = math.exp %52 : vector<4x32xf32>
    %cst_16 = arith.constant 1.000000e+00 : f32
    %54 = vector.broadcast %cst_16 : f32 to vector<4x32xf32>
    %55 = arith.addf %54, %53 : vector<4x32xf32>
    %56 = arith.divf %54, %55 : vector<4x32xf32>
    %57 = vector.extract_strided_slice %46 {offsets = [0, 128], sizes = [4, 32], strides = [1, 1]} : vector<4x384xf32> to vector<4x32xf32>
    %58 = vector.extract_strided_slice %48 {offsets = [0, 128], sizes = [4, 32], strides = [1, 1]} : vector<4x384xf32> to vector<4x32xf32>
    %59 = arith.addf %57, %58 : vector<4x32xf32>
    %60 = arith.negf %59 : vector<4x32xf32>
    %61 = math.exp %60 : vector<4x32xf32>
    %cst_17 = arith.constant 1.000000e+00 : f32
    %62 = vector.broadcast %cst_17 : f32 to vector<4x32xf32>
    %63 = arith.addf %62, %61 : vector<4x32xf32>
    %64 = arith.divf %62, %63 : vector<4x32xf32>
    %65 = vector.extract_strided_slice %46 {offsets = [0, 256], sizes = [4, 32], strides = [1, 1]} : vector<4x384xf32> to vector<4x32xf32>
    %66 = vector.extract_strided_slice %48 {offsets = [0, 256], sizes = [4, 32], strides = [1, 1]} : vector<4x384xf32> to vector<4x32xf32>
    %67 = arith.addf %66, %12 : vector<4x32xf32>
    %68 = arith.mulf %56, %67 : vector<4x32xf32>
    %69 = arith.addf %65, %68 : vector<4x32xf32>
    %70 = math.tanh %69 : vector<4x32xf32>
    %cst_18 = arith.constant 1.000000e+00 : f32
    %71 = vector.broadcast %cst_18 : f32 to vector<4x32xf32>
    %72 = arith.subf %71, %64 : vector<4x32xf32>
    %73 = arith.mulf %72, %70 : vector<4x32xf32>
    %74 = arith.mulf %64, %44 : vector<4x32xf32>
    %75 = arith.addf %73, %74 : vector<4x32xf32>
    %76 = vector.extract_strided_slice %7 {offsets = [0, 2, 0], sizes = [4, 1, 384], strides = [1, 1, 1]} : vector<4x8x384xf32> to vector<4x1x384xf32>
    %77 = vector.shape_cast %76 : vector<4x1x384xf32> to vector<4x384xf32>
    %78 = arith.truncf %75 : vector<4x32xf32> to vector<4x32xbf16>
    %cst_19 = arith.constant dense<0.000000e+00> : vector<4x384xf32>
    %79 = tpu.matmul %78, %9, %cst_19 {dimension_numbers = #tpu.dot_dimension_numbers<[1], [0], [0], [1], [0, 0, 1, 1], [], []>} : vector<4x32xbf16>, vector<32x384xbf16>, vector<4x384xf32> -> vector<4x384xf32>
    %80 = vector.extract_strided_slice %77 {offsets = [0, 0], sizes = [4, 32], strides = [1, 1]} : vector<4x384xf32> to vector<4x32xf32>
    %81 = vector.extract_strided_slice %79 {offsets = [0, 0], sizes = [4, 32], strides = [1, 1]} : vector<4x384xf32> to vector<4x32xf32>
    %82 = arith.addf %80, %81 : vector<4x32xf32>
    %83 = arith.negf %82 : vector<4x32xf32>
    %84 = math.exp %83 : vector<4x32xf32>
    %cst_20 = arith.constant 1.000000e+00 : f32
    %85 = vector.broadcast %cst_20 : f32 to vector<4x32xf32>
    %86 = arith.addf %85, %84 : vector<4x32xf32>
    %87 = arith.divf %85, %86 : vector<4x32xf32>
    %88 = vector.extract_strided_slice %77 {offsets = [0, 128], sizes = [4, 32], strides = [1, 1]} : vector<4x384xf32> to vector<4x32xf32>
    %89 = vector.extract_strided_slice %79 {offsets = [0, 128], sizes = [4, 32], strides = [1, 1]} : vector<4x384xf32> to vector<4x32xf32>
    %90 = arith.addf %88, %89 : vector<4x32xf32>
    %91 = arith.negf %90 : vector<4x32xf32>
    %92 = math.exp %91 : vector<4x32xf32>
    %cst_21 = arith.constant 1.000000e+00 : f32
    %93 = vector.broadcast %cst_21 : f32 to vector<4x32xf32>
    %94 = arith.addf %93, %92 : vector<4x32xf32>
    %95 = arith.divf %93, %94 : vector<4x32xf32>
    %96 = vector.extract_strided_slice %77 {offsets = [0, 256], sizes = [4, 32], strides = [1, 1]} : vector<4x384xf32> to vector<4x32xf32>
    %97 = vector.extract_strided_slice %79 {offsets = [0, 256], sizes = [4, 32], strides = [1, 1]} : vector<4x384xf32> to vector<4x32xf32>
    %98 = arith.addf %97, %12 : vector<4x32xf32>
    %99 = arith.mulf %87, %98 : vector<4x32xf32>
    %100 = arith.addf %96, %99 : vector<4x32xf32>
    %101 = math.tanh %100 : vector<4x32xf32>
    %cst_22 = arith.constant 1.000000e+00 : f32
    %102 = vector.broadcast %cst_22 : f32 to vector<4x32xf32>
    %103 = arith.subf %102, %95 : vector<4x32xf32>
    %104 = arith.mulf %103, %101 : vector<4x32xf32>
    %105 = arith.mulf %95, %75 : vector<4x32xf32>
    %106 = arith.addf %104, %105 : vector<4x32xf32>
    %107 = vector.extract_strided_slice %7 {offsets = [0, 3, 0], sizes = [4, 1, 384], strides = [1, 1, 1]} : vector<4x8x384xf32> to vector<4x1x384xf32>
    %108 = vector.shape_cast %107 : vector<4x1x384xf32> to vector<4x384xf32>
    %109 = arith.truncf %106 : vector<4x32xf32> to vector<4x32xbf16>
    %cst_23 = arith.constant dense<0.000000e+00> : vector<4x384xf32>
    %110 = tpu.matmul %109, %9, %cst_23 {dimension_numbers = #tpu.dot_dimension_numbers<[1], [0], [0], [1], [0, 0, 1, 1], [], []>} : vector<4x32xbf16>, vector<32x384xbf16>, vector<4x384xf32> -> vector<4x384xf32>
    %111 = vector.extract_strided_slice %108 {offsets = [0, 0], sizes = [4, 32], strides = [1, 1]} : vector<4x384xf32> to vector<4x32xf32>
    %112 = vector.extract_strided_slice %110 {offsets = [0, 0], sizes = [4, 32], strides = [1, 1]} : vector<4x384xf32> to vector<4x32xf32>
    %113 = arith.addf %111, %112 : vector<4x32xf32>
    %114 = arith.negf %113 : vector<4x32xf32>
    %115 = math.exp %114 : vector<4x32xf32>
    %cst_24 = arith.constant 1.000000e+00 : f32
    %116 = vector.broadcast %cst_24 : f32 to vector<4x32xf32>
    %117 = arith.addf %116, %115 : vector<4x32xf32>
    %118 = arith.divf %116, %117 : vector<4x32xf32>
    %119 = vector.extract_strided_slice %108 {offsets = [0, 128], sizes = [4, 32], strides = [1, 1]} : vector<4x384xf32> to vector<4x32xf32>
    %120 = vector.extract_strided_slice %110 {offsets = [0, 128], sizes = [4, 32], strides = [1, 1]} : vector<4x384xf32> to vector<4x32xf32>
    %121 = arith.addf %119, %120 : vector<4x32xf32>
    %122 = arith.negf %121 : vector<4x32xf32>
    %123 = math.exp %122 : vector<4x32xf32>
    %cst_25 = arith.constant 1.000000e+00 : f32
    %124 = vector.broadcast %cst_25 : f32 to vector<4x32xf32>
    %125 = arith.addf %124, %123 : vector<4x32xf32>
    %126 = arith.divf %124, %125 : vector<4x32xf32>
    %127 = vector.extract_strided_slice %108 {offsets = [0, 256], sizes = [4, 32], strides = [1, 1]} : vector<4x384xf32> to vector<4x32xf32>
    %128 = vector.extract_strided_slice %110 {offsets = [0, 256], sizes = [4, 32], strides = [1, 1]} : vector<4x384xf32> to vector<4x32xf32>
    %129 = arith.addf %128, %12 : vector<4x32xf32>
    %130 = arith.mulf %118, %129 : vector<4x32xf32>
    %131 = arith.addf %127, %130 : vector<4x32xf32>
    %132 = math.tanh %131 : vector<4x32xf32>
    %cst_26 = arith.constant 1.000000e+00 : f32
    %133 = vector.broadcast %cst_26 : f32 to vector<4x32xf32>
    %134 = arith.subf %133, %126 : vector<4x32xf32>
    %135 = arith.mulf %134, %132 : vector<4x32xf32>
    %136 = arith.mulf %126, %106 : vector<4x32xf32>
    %137 = arith.addf %135, %136 : vector<4x32xf32>
    %138 = vector.extract_strided_slice %7 {offsets = [0, 4, 0], sizes = [4, 1, 384], strides = [1, 1, 1]} : vector<4x8x384xf32> to vector<4x1x384xf32>
    %139 = vector.shape_cast %138 : vector<4x1x384xf32> to vector<4x384xf32>
    %140 = arith.truncf %137 : vector<4x32xf32> to vector<4x32xbf16>
    %cst_27 = arith.constant dense<0.000000e+00> : vector<4x384xf32>
    %141 = tpu.matmul %140, %9, %cst_27 {dimension_numbers = #tpu.dot_dimension_numbers<[1], [0], [0], [1], [0, 0, 1, 1], [], []>} : vector<4x32xbf16>, vector<32x384xbf16>, vector<4x384xf32> -> vector<4x384xf32>
    %142 = vector.extract_strided_slice %139 {offsets = [0, 0], sizes = [4, 32], strides = [1, 1]} : vector<4x384xf32> to vector<4x32xf32>
    %143 = vector.extract_strided_slice %141 {offsets = [0, 0], sizes = [4, 32], strides = [1, 1]} : vector<4x384xf32> to vector<4x32xf32>
    %144 = arith.addf %142, %143 : vector<4x32xf32>
    %145 = arith.negf %144 : vector<4x32xf32>
    %146 = math.exp %145 : vector<4x32xf32>
    %cst_28 = arith.constant 1.000000e+00 : f32
    %147 = vector.broadcast %cst_28 : f32 to vector<4x32xf32>
    %148 = arith.addf %147, %146 : vector<4x32xf32>
    %149 = arith.divf %147, %148 : vector<4x32xf32>
    %150 = vector.extract_strided_slice %139 {offsets = [0, 128], sizes = [4, 32], strides = [1, 1]} : vector<4x384xf32> to vector<4x32xf32>
    %151 = vector.extract_strided_slice %141 {offsets = [0, 128], sizes = [4, 32], strides = [1, 1]} : vector<4x384xf32> to vector<4x32xf32>
    %152 = arith.addf %150, %151 : vector<4x32xf32>
    %153 = arith.negf %152 : vector<4x32xf32>
    %154 = math.exp %153 : vector<4x32xf32>
    %cst_29 = arith.constant 1.000000e+00 : f32
    %155 = vector.broadcast %cst_29 : f32 to vector<4x32xf32>
    %156 = arith.addf %155, %154 : vector<4x32xf32>
    %157 = arith.divf %155, %156 : vector<4x32xf32>
    %158 = vector.extract_strided_slice %139 {offsets = [0, 256], sizes = [4, 32], strides = [1, 1]} : vector<4x384xf32> to vector<4x32xf32>
    %159 = vector.extract_strided_slice %141 {offsets = [0, 256], sizes = [4, 32], strides = [1, 1]} : vector<4x384xf32> to vector<4x32xf32>
    %160 = arith.addf %159, %12 : vector<4x32xf32>
    %161 = arith.mulf %149, %160 : vector<4x32xf32>
    %162 = arith.addf %158, %161 : vector<4x32xf32>
    %163 = math.tanh %162 : vector<4x32xf32>
    %cst_30 = arith.constant 1.000000e+00 : f32
    %164 = vector.broadcast %cst_30 : f32 to vector<4x32xf32>
    %165 = arith.subf %164, %157 : vector<4x32xf32>
    %166 = arith.mulf %165, %163 : vector<4x32xf32>
    %167 = arith.mulf %157, %137 : vector<4x32xf32>
    %168 = arith.addf %166, %167 : vector<4x32xf32>
    %169 = vector.extract_strided_slice %7 {offsets = [0, 5, 0], sizes = [4, 1, 384], strides = [1, 1, 1]} : vector<4x8x384xf32> to vector<4x1x384xf32>
    %170 = vector.shape_cast %169 : vector<4x1x384xf32> to vector<4x384xf32>
    %171 = arith.truncf %168 : vector<4x32xf32> to vector<4x32xbf16>
    %cst_31 = arith.constant dense<0.000000e+00> : vector<4x384xf32>
    %172 = tpu.matmul %171, %9, %cst_31 {dimension_numbers = #tpu.dot_dimension_numbers<[1], [0], [0], [1], [0, 0, 1, 1], [], []>} : vector<4x32xbf16>, vector<32x384xbf16>, vector<4x384xf32> -> vector<4x384xf32>
    %173 = vector.extract_strided_slice %170 {offsets = [0, 0], sizes = [4, 32], strides = [1, 1]} : vector<4x384xf32> to vector<4x32xf32>
    %174 = vector.extract_strided_slice %172 {offsets = [0, 0], sizes = [4, 32], strides = [1, 1]} : vector<4x384xf32> to vector<4x32xf32>
    %175 = arith.addf %173, %174 : vector<4x32xf32>
    %176 = arith.negf %175 : vector<4x32xf32>
    %177 = math.exp %176 : vector<4x32xf32>
    %cst_32 = arith.constant 1.000000e+00 : f32
    %178 = vector.broadcast %cst_32 : f32 to vector<4x32xf32>
    %179 = arith.addf %178, %177 : vector<4x32xf32>
    %180 = arith.divf %178, %179 : vector<4x32xf32>
    %181 = vector.extract_strided_slice %170 {offsets = [0, 128], sizes = [4, 32], strides = [1, 1]} : vector<4x384xf32> to vector<4x32xf32>
    %182 = vector.extract_strided_slice %172 {offsets = [0, 128], sizes = [4, 32], strides = [1, 1]} : vector<4x384xf32> to vector<4x32xf32>
    %183 = arith.addf %181, %182 : vector<4x32xf32>
    %184 = arith.negf %183 : vector<4x32xf32>
    %185 = math.exp %184 : vector<4x32xf32>
    %cst_33 = arith.constant 1.000000e+00 : f32
    %186 = vector.broadcast %cst_33 : f32 to vector<4x32xf32>
    %187 = arith.addf %186, %185 : vector<4x32xf32>
    %188 = arith.divf %186, %187 : vector<4x32xf32>
    %189 = vector.extract_strided_slice %170 {offsets = [0, 256], sizes = [4, 32], strides = [1, 1]} : vector<4x384xf32> to vector<4x32xf32>
    %190 = vector.extract_strided_slice %172 {offsets = [0, 256], sizes = [4, 32], strides = [1, 1]} : vector<4x384xf32> to vector<4x32xf32>
    %191 = arith.addf %190, %12 : vector<4x32xf32>
    %192 = arith.mulf %180, %191 : vector<4x32xf32>
    %193 = arith.addf %189, %192 : vector<4x32xf32>
    %194 = math.tanh %193 : vector<4x32xf32>
    %cst_34 = arith.constant 1.000000e+00 : f32
    %195 = vector.broadcast %cst_34 : f32 to vector<4x32xf32>
    %196 = arith.subf %195, %188 : vector<4x32xf32>
    %197 = arith.mulf %196, %194 : vector<4x32xf32>
    %198 = arith.mulf %188, %168 : vector<4x32xf32>
    %199 = arith.addf %197, %198 : vector<4x32xf32>
    %200 = vector.extract_strided_slice %7 {offsets = [0, 6, 0], sizes = [4, 1, 384], strides = [1, 1, 1]} : vector<4x8x384xf32> to vector<4x1x384xf32>
    %201 = vector.shape_cast %200 : vector<4x1x384xf32> to vector<4x384xf32>
    %202 = arith.truncf %199 : vector<4x32xf32> to vector<4x32xbf16>
    %cst_35 = arith.constant dense<0.000000e+00> : vector<4x384xf32>
    %203 = tpu.matmul %202, %9, %cst_35 {dimension_numbers = #tpu.dot_dimension_numbers<[1], [0], [0], [1], [0, 0, 1, 1], [], []>} : vector<4x32xbf16>, vector<32x384xbf16>, vector<4x384xf32> -> vector<4x384xf32>
    %204 = vector.extract_strided_slice %201 {offsets = [0, 0], sizes = [4, 32], strides = [1, 1]} : vector<4x384xf32> to vector<4x32xf32>
    %205 = vector.extract_strided_slice %203 {offsets = [0, 0], sizes = [4, 32], strides = [1, 1]} : vector<4x384xf32> to vector<4x32xf32>
    %206 = arith.addf %204, %205 : vector<4x32xf32>
    %207 = arith.negf %206 : vector<4x32xf32>
    %208 = math.exp %207 : vector<4x32xf32>
    %cst_36 = arith.constant 1.000000e+00 : f32
    %209 = vector.broadcast %cst_36 : f32 to vector<4x32xf32>
    %210 = arith.addf %209, %208 : vector<4x32xf32>
    %211 = arith.divf %209, %210 : vector<4x32xf32>
    %212 = vector.extract_strided_slice %201 {offsets = [0, 128], sizes = [4, 32], strides = [1, 1]} : vector<4x384xf32> to vector<4x32xf32>
    %213 = vector.extract_strided_slice %203 {offsets = [0, 128], sizes = [4, 32], strides = [1, 1]} : vector<4x384xf32> to vector<4x32xf32>
    %214 = arith.addf %212, %213 : vector<4x32xf32>
    %215 = arith.negf %214 : vector<4x32xf32>
    %216 = math.exp %215 : vector<4x32xf32>
    %cst_37 = arith.constant 1.000000e+00 : f32
    %217 = vector.broadcast %cst_37 : f32 to vector<4x32xf32>
    %218 = arith.addf %217, %216 : vector<4x32xf32>
    %219 = arith.divf %217, %218 : vector<4x32xf32>
    %220 = vector.extract_strided_slice %201 {offsets = [0, 256], sizes = [4, 32], strides = [1, 1]} : vector<4x384xf32> to vector<4x32xf32>
    %221 = vector.extract_strided_slice %203 {offsets = [0, 256], sizes = [4, 32], strides = [1, 1]} : vector<4x384xf32> to vector<4x32xf32>
    %222 = arith.addf %221, %12 : vector<4x32xf32>
    %223 = arith.mulf %211, %222 : vector<4x32xf32>
    %224 = arith.addf %220, %223 : vector<4x32xf32>
    %225 = math.tanh %224 : vector<4x32xf32>
    %cst_38 = arith.constant 1.000000e+00 : f32
    %226 = vector.broadcast %cst_38 : f32 to vector<4x32xf32>
    %227 = arith.subf %226, %219 : vector<4x32xf32>
    %228 = arith.mulf %227, %225 : vector<4x32xf32>
    %229 = arith.mulf %219, %199 : vector<4x32xf32>
    %230 = arith.addf %228, %229 : vector<4x32xf32>
    %231 = vector.extract_strided_slice %7 {offsets = [0, 7, 0], sizes = [4, 1, 384], strides = [1, 1, 1]} : vector<4x8x384xf32> to vector<4x1x384xf32>
    %232 = vector.shape_cast %231 : vector<4x1x384xf32> to vector<4x384xf32>
    %233 = arith.truncf %230 : vector<4x32xf32> to vector<4x32xbf16>
    %cst_39 = arith.constant dense<0.000000e+00> : vector<4x384xf32>
    %234 = tpu.matmul %233, %9, %cst_39 {dimension_numbers = #tpu.dot_dimension_numbers<[1], [0], [0], [1], [0, 0, 1, 1], [], []>} : vector<4x32xbf16>, vector<32x384xbf16>, vector<4x384xf32> -> vector<4x384xf32>
    %235 = vector.extract_strided_slice %232 {offsets = [0, 0], sizes = [4, 32], strides = [1, 1]} : vector<4x384xf32> to vector<4x32xf32>
    %236 = vector.extract_strided_slice %234 {offsets = [0, 0], sizes = [4, 32], strides = [1, 1]} : vector<4x384xf32> to vector<4x32xf32>
    %237 = arith.addf %235, %236 : vector<4x32xf32>
    %238 = arith.negf %237 : vector<4x32xf32>
    %239 = math.exp %238 : vector<4x32xf32>
    %cst_40 = arith.constant 1.000000e+00 : f32
    %240 = vector.broadcast %cst_40 : f32 to vector<4x32xf32>
    %241 = arith.addf %240, %239 : vector<4x32xf32>
    %242 = arith.divf %240, %241 : vector<4x32xf32>
    %243 = vector.extract_strided_slice %232 {offsets = [0, 128], sizes = [4, 32], strides = [1, 1]} : vector<4x384xf32> to vector<4x32xf32>
    %244 = vector.extract_strided_slice %234 {offsets = [0, 128], sizes = [4, 32], strides = [1, 1]} : vector<4x384xf32> to vector<4x32xf32>
    %245 = arith.addf %243, %244 : vector<4x32xf32>
    %246 = arith.negf %245 : vector<4x32xf32>
    %247 = math.exp %246 : vector<4x32xf32>
    %cst_41 = arith.constant 1.000000e+00 : f32
    %248 = vector.broadcast %cst_41 : f32 to vector<4x32xf32>
    %249 = arith.addf %248, %247 : vector<4x32xf32>
    %250 = arith.divf %248, %249 : vector<4x32xf32>
    %251 = vector.extract_strided_slice %232 {offsets = [0, 256], sizes = [4, 32], strides = [1, 1]} : vector<4x384xf32> to vector<4x32xf32>
    %252 = vector.extract_strided_slice %234 {offsets = [0, 256], sizes = [4, 32], strides = [1, 1]} : vector<4x384xf32> to vector<4x32xf32>
    %253 = arith.addf %252, %12 : vector<4x32xf32>
    %254 = arith.mulf %242, %253 : vector<4x32xf32>
    %255 = arith.addf %251, %254 : vector<4x32xf32>
    %256 = math.tanh %255 : vector<4x32xf32>
    %cst_42 = arith.constant 1.000000e+00 : f32
    %257 = vector.broadcast %cst_42 : f32 to vector<4x32xf32>
    %258 = arith.subf %257, %250 : vector<4x32xf32>
    %259 = arith.mulf %258, %256 : vector<4x32xf32>
    %260 = arith.mulf %250, %230 : vector<4x32xf32>
    %261 = arith.addf %259, %260 : vector<4x32xf32>
    %262 = arith.truncf %261 : vector<4x32xf32> to vector<4x32xbf16>
    %c0_43 = arith.constant 0 : index
    %c0_44 = arith.constant 0 : index
    %263 = vector.load %arg6[%c0_43, %c0_44] : memref<32x38xf32, #tpu.memory_space<vmem>>, vector<32x38xf32>
    %264 = arith.truncf %263 : vector<32x38xf32> to vector<32x38xbf16>
    %cst_45 = arith.constant dense<0.000000e+00> : vector<4x38xf32>
    %265 = tpu.matmul %262, %264, %cst_45 {dimension_numbers = #tpu.dot_dimension_numbers<[1], [0], [0], [1], [0, 0, 1, 1], [], []>} : vector<4x32xbf16>, vector<32x38xbf16>, vector<4x38xf32> -> vector<4x38xf32>
    %266 = vector.extract_strided_slice %261 {offsets = [2, 0], sizes = [2, 32], strides = [1, 1]} : vector<4x32xf32> to vector<2x32xf32>
    %267 = vector.extract_strided_slice %265 {offsets = [0, 0], sizes = [2, 32], strides = [1, 1]} : vector<4x38xf32> to vector<2x32xf32>
    %c0_46 = arith.constant 0 : index
    %c0_47 = arith.constant 0 : index
    %268 = vector.load %arg1[%c0_46, %c0_47] : memref<2x1xf32, #tpu.memory_space<vmem>>, vector<2x1xf32>
    %c0_48 = arith.constant 0 : index
    %c0_49 = arith.constant 0 : index
    %269 = vector.load %arg9[%c0_48, %c0_49] : memref<1x32xf32, #tpu.memory_space<vmem>>, vector<1x32xf32>
    %270 = vector.broadcast %268 : vector<2x1xf32> to vector<2x32xf32>
    %271 = vector.broadcast %269 : vector<1x32xf32> to vector<2x32xf32>
    %272 = arith.mulf %270, %271 : vector<2x32xf32>
    %273 = arith.addf %267, %272 : vector<2x32xf32>
    %c0_50 = arith.constant 0 : index
    %c0_51 = arith.constant 0 : index
    %274 = vector.load %arg7[%c0_50, %c0_51] : memref<1x32xf32, #tpu.memory_space<vmem>>, vector<1x32xf32>
    %275 = vector.broadcast %274 : vector<1x32xf32> to vector<2x32xf32>
    %276 = arith.addf %273, %275 : vector<2x32xf32>
    %277 = vector.extract_strided_slice %265 {offsets = [0, 32], sizes = [2, 3], strides = [1, 1]} : vector<4x38xf32> to vector<2x3xf32>
    %278 = vector.extract_strided_slice %265 {offsets = [2, 35], sizes = [2, 3], strides = [1, 1]} : vector<4x38xf32> to vector<2x3xf32>
    %279 = arith.addf %277, %278 : vector<2x3xf32>
    %c0_52 = arith.constant 0 : index
    %c0_53 = arith.constant 0 : index
    %280 = vector.load %arg8[%c0_52, %c0_53] : memref<1x3xf32, #tpu.memory_space<vmem>>, vector<1x3xf32>
    %281 = vector.broadcast %280 : vector<1x3xf32> to vector<2x3xf32>
    %282 = arith.addf %279, %281 : vector<2x3xf32>
    %cst_54 = arith.constant 0.000000e+00 : f32
    %283 = vector.broadcast %cst_54 : f32 to vector<2x61xf32>
    %284 = tpu.concatenate %276, %266, %282, %283 in 1 : vector<2x32xf32>, vector<2x32xf32>, vector<2x3xf32>, vector<2x61xf32> -> vector<2x128xf32>
    %c0_55 = arith.constant 0 : index
    %c0_56 = arith.constant 0 : index
    %285 = vector.load %arg10[%c0_55, %c0_56] : memref<2x128xf32, #tpu.memory_space<vmem>>, vector<2x128xf32>
    tpu.vector_store %arg10[%c0_55, %c0_56], %284 {strides = array<i32>} : memref<2x128xf32, #tpu.memory_space<vmem>>, vector<2x128xf32>,
    return
  }
}

</mosaic_0001>

<bundles_post_ra>
// kernel: icm_forward.1
= control target key start
LH: loop header
LB: loop body
LE: loop exit
PB: predicated region body
PF: predicated region fallthrough
CT: control target
= control target key end

     0   :  { %15 = vsyncpa [#allocation3], 0  ;;  %s3520_s0 = inlined_call_operand.vmem [shape: f32[4,8,4], index: 0, kind: input, shape index: {}]   ;;  %s3521_s1 = inlined_call_operand.vmem [shape: f32[2,1], index: 1, kind: input, shape index: {}]   ;;  %s3522_s2 = inlined_call_operand.hbm [shape: f32[4,384], index: 2, kind: input, shape index: {}]   ;;  %s3523_s3 = inlined_call_operand.vmem [shape: f32[32,384], index: 3, kind: input, shape index: {}]   ;;  %s3524_s4 = inlined_call_operand.hbm [shape: f32[1,384], index: 4, kind: input, shape index: {}]   ;;  %s3525_s5 = inlined_call_operand.vmem [shape: f32[1,32], index: 5, kind: input, shape index: {}]   ;;  %s3526_s6 = inlined_call_operand.vmem [shape: f32[32,38], index: 6, kind: input, shape index: {}]   ;;  %s3527_s7 = inlined_call_operand.vmem [shape: f32[1,32], index: 7, kind: input, shape index: {}]   ;;  %s3528_s8 = inlined_call_operand.hbm [shape: f32[1,3], index: 8, kind: input, shape index: {}]   ;;  %s3529_s9 = inlined_call_operand.hbm [shape: f32[1,32], index: 9, kind: input, shape index: {}]   ;;  %s3530_s10 = inlined_call_operand.vmem [shape: f32[2,128], index: 10, kind: output, shape index: {}]  }
   0x1   :  { %16 = vsyncpa [#allocation5], 0 }
   0x2   :  { %17 = vsyncpa [#allocation8], 0  ;;  %s2874_s13 = smov [#allocation4]   ;;  %s2875_s15 = smov [#allocation2]  }
   0x3   :  { %s40_s14 = sshll.u32 %s2874_s13, 4  ;;  %s28_s16 = sshll.u32 %s2875_s15, 4  ;;  %s41_s14 = int_to_ptr.vmem [resolvable:$true] %s40_s14  ;;  %s29_s16 = int_to_ptr.vmem [resolvable:$true] %s28_s16 }
   0x4   :  { %s2780_s19 = scalar_lea.hbm %s3524_s4, 48 }
   0x5   :  { %p2781_p0 = scmp.ne.s32.totalorder %s3524_s4, %s2780_s19  ;;  %p2784_p1 = scmp.lt.u32.totalorder %s2780_s19, %s3524_s4 }
   0x7   :  { %p2786_p2 = pnand %p2784_p1, %p2781_p0 }
   0x9   :  { %2789 = shalt.err (!%p2786_p2)
}
   0xa   :  { %s2790_s24 = scalar_lea.vmem %s41_s14, 48  ;;  %s2794_s25 = scalar_lea.vmem %s41_s14, 64 }
   0xb   :  { %p2791_p3 = scmp.ne.s32.totalorder %s41_s14, %s2790_s24  ;;  %p2795_p4 = scmp.lt.s32.totalorder %s41_s14, %s41_s14 }
   0xc   :  { %p2796_p5 = scmp.lt.s32.totalorder %s2794_s25, %s2790_s24 }
   0xe   :  { %p2797_p6 = por %p2796_p5, %p2795_p4 }
  0x10   :  { %p2798_p7 = pnand %p2797_p6, %p2791_p3 }
  0x12   :  { %2801 = shalt.err (!%p2798_p7)
}
  0x13   :  { %43 = dma.hbm_to_vmem [thread:$0]  %s3524_s4, 48, %s41_s14, [#allocation5]  }
  0x14   :  { %s2802_s30 = scalar_lea.hbm %s3522_s2, 192 }
  0x15   :  { %p2803_p8 = scmp.ne.s32.totalorder %s3522_s2, %s2802_s30  ;;  %p2806_p9 = scmp.lt.u32.totalorder %s2802_s30, %s3522_s2 }
  0x17   :  { %p2808_p10 = pnand %p2806_p9, %p2803_p8 }
  0x19   :  { %2811 = shalt.err (!%p2808_p10)
}
  0x1a   :  { %s2812_s17 = scalar_lea.vmem %s29_s16, 192  ;;  %p2817_p12 = scmp.lt.s32.totalorder %s29_s16, %s29_s16 }
  0x1b   :  { %p2813_p11 = scmp.ne.s32.totalorder %s29_s16, %s2812_s17  ;;  %p2818_p13 = scmp.lt.s32.totalorder %s2812_s17, %s2812_s17 }
  0x1d   :  { %p2819_p0 = por %p2818_p13, %p2817_p12 }
  0x1f   :  { %p2820_p1 = pnand %p2819_p0, %p2813_p11 }
  0x21   :  { %2823 = shalt.err (!%p2820_p1)
}
  0x22   :  { %31 = dma.hbm_to_vmem [thread:$0]  %s3522_s2, 192, %s29_s16, [#allocation3]  }
  0x23   :  { %s2876_s18 = smov [#allocation6]   ;;  %s2877_s20 = smov [#allocation7]  }
  0x24   :  { %s56_s19 = sshll.u32 %s2876_s18, 4  ;;  %s66_s21 = sshll.u32 %s2877_s20, 4  ;;  %s57_s19 = int_to_ptr.vmem [resolvable:$true] %s56_s19  ;;  %s67_s21 = int_to_ptr.vmem [resolvable:$true] %s66_s21 }
  0x25   :  { %s2824_s24 = scalar_lea.hbm %s3528_s8, 16 }
  0x26   :  { %p2825_p2 = scmp.ne.s32.totalorder %s3528_s8, %s2824_s24  ;;  %p2828_p3 = scmp.lt.u32.totalorder %s2824_s24, %s3528_s8 }
  0x28   :  { %p2830_p4 = pnand %p2828_p3, %p2825_p2 }
  0x2a   :  { %2833 = shalt.err (!%p2830_p4)
}
  0x2b   :  { %s2834_s2 = scalar_lea.vmem %s57_s19, 16  ;;  %s2838_s16 = scalar_lea.vmem %s57_s19, 32 }
  0x2c   :  { %p2835_p5 = scmp.ne.s32.totalorder %s57_s19, %s2834_s2  ;;  %p2839_p6 = scmp.lt.s32.totalorder %s57_s19, %s57_s19 }
  0x2d   :  { %p2840_p7 = scmp.lt.s32.totalorder %s2838_s16, %s2834_s2 }
  0x2f   :  { %p2841_p8 = por %p2840_p7, %p2839_p6 }
  0x31   :  { %p2842_p9 = pnand %p2841_p8, %p2835_p5 }
  0x33   :  { %2845 = shalt.err (!%p2842_p9)
}
  0x34   :  { %59 = dma.hbm_to_vmem [thread:$0]  %s3528_s8, 16, %s57_s19, [#allocation5]  }
  0x35   :  { %s2846_s13 = scalar_lea.hbm %s3529_s9, 16 }
  0x36   :  { %p2847_p10 = scmp.ne.s32.totalorder %s3529_s9, %s2846_s13  ;;  %p2850_p11 = scmp.lt.u32.totalorder %s2846_s13, %s3529_s9 }
  0x38   :  { %p2852_p12 = pnand %p2850_p11, %p2847_p10 }
  0x3a   :  { %2855 = shalt.err (!%p2852_p12)
}
  0x3b   :  { %s2856_s18 = scalar_lea.vmem %s67_s21, 16  ;;  %s2860_s20 = scalar_lea.vmem %s67_s21, 32 }
  0x3c   :  { %p2857_p13 = scmp.ne.s32.totalorder %s67_s21, %s2856_s18  ;;  %p2861_p0 = scmp.lt.s32.totalorder %s67_s21, %s67_s21 }
  0x3d   :  { %p2862_p1 = scmp.lt.s32.totalorder %s2860_s20, %s2856_s18 }
  0x3f   :  { %p2863_p2 = por %p2862_p1, %p2861_p0 }
  0x41   :  { %p2864_p3 = pnand %p2863_p2, %p2857_p13 }
  0x43   :  { %2867 = shalt.err (!%p2864_p3)
}
  0x44   :  { %69 = dma.hbm_to_vmem [thread:$0]  %s3529_s9, 16, %s67_s21, [#allocation8]  }
  0x45   :  { %2868 = dma.done.wait [#allocation3], 192  }
  0x46   :  { %2869 = vsyncadd [#allocation3], 4294967104 }
  0x47   :  { %2870 = dma.done.wait [#allocation5], 64  }
  0x48   :  { %2871 = vsyncadd [#allocation5], 4294967232 }
  0x49   :  { %2872 = dma.done.wait [#allocation8], 16  }
  0x4a   :  { %2873 = vsyncadd [#allocation8], 4294967280  ;;  %v2878_v0 = vmov 0.0   ;;  %v2879_v1 = vmov 0   ;;  %vm122_vm0 = vcmask 1043456   ;;  %vm109_vm1 = vcmask 31744  }
  0x4b   :  { %193 = vmatprep.mubr.f32.mxu0 %v2878_v0  ;;  %2456 = vset.pattern.permute.xlu1 %v2879_v1  ;;  %v88_v2 = vld [vmem:[#allocation2 + $0x8] sm:$0xf]  ;;  %v83_v3 = vld [vmem:[%s3520_s0] sm:$0xff]  ;;  %v306_v11 = vld [vmem:[%s3523_s3 + $0x18] sm:$0xff]  ;;  %vm2880_vm2 = vmmov 0   ;;  %v91_v27 = vlaneseq  ;;  %vm535_vm3 = vcmask 1041409  }
  0x4c   :  { %2457 = vset.pattern.permute.xlu0 %v2879_v1  ;;  %v87_v4 = vld [vmem:[#allocation2] sm:$0xff]  ;;  %2367 = vmatprep.subr.msk.mxu1 %vm122_vm0, %v88_v2  ;;  %v84_v6 = vld [vmem:[%s3520_s0 + $0x8] sm:$0xff]  ;;  %v85_v12 = vld [vmem:[%s3520_s0 + $0x10] sm:$0xff]  ;;  %vm538_vm4 = vcmask 1042434   ;;  %vm541_vm5 = vcmask 1043459   ;;  %vm328_vm6 = vcmask 261120  }
  0x4d   :  { %2369 = vmatprep.mubr.msk.f32.mxu1 %vm109_vm1, %v83_v3  ;;  %v108_v5 = vcombine.high %v87_v4, %v87_v4  ;;  %v304_v7 = vld [vmem:[%s3523_s3 + $0x8] sm:$0xff]  ;;  %v307_v8 = vld [vmem:[%s3523_s3 + $0x20] sm:$0xff]  ;;  %2368 = vmatpush3.msk.msra.mxu1 %vm122_vm0, %v88_v2  ;;  %v86_v14 = vld [vmem:[%s3520_s0 + $0x18] sm:$0xff]  ;;  %v3090_v28 = vshrl.u32 %v91_v27, 7  ;;  %vm2229_vm7 = vcmask 523264   ;;  %vm2231_vm8 = vcmask 547840  }
  0x4e   :  { %v3004_v9 = vpack.c.bf16 %v307_v8, %v304_v7  ;;  %v303_v10 = vld [vmem:[%s3523_s3] sm:$0xff]  ;;  %2370 = vmatmul.mubr.msk.f32.vlgmr.msra.gmra.mrb[0].mxu1 %vm109_vm1, %v84_v6  ;;  %v310_v15 = vld [vmem:[%s3523_s3 + $0x38] sm:$0xff]  ;;  %v313_v16 = vld [vmem:[%s3523_s3 + $0x50] sm:$0xff] }
  0x4f   :  { %2241 = vmatprep.subr.msk.mxu0 %vm122_vm0, %v108_v5  ;;  %v3017_v13 = vpack.c.bf16 %v306_v11, %v303_v10  ;;  %v3030_v17 = vpack.c.bf16 %v313_v16, %v310_v15  ;;  %v309_v18 = vld [vmem:[%s3523_s3 + $0x30] sm:$0xff]  ;;  %v312_v19 = vld [vmem:[%s3523_s3 + $0x48] sm:$0xff]  ;;  %2372 = vmatprep.mubr.msk.f32.mxu1 %vm109_vm1, %v85_v12  ;;  %v311_v24 = vld [vmem:[%s3523_s3 + $0x40] sm:$0xff]  ;;  %v93_v29 = vsub.s32 0, %v3090_v28  ;;  %v97_v32 = vsub.s32 1, %v3090_v28 }
  0x50   :  { %332 = vmatprep.subr.bf16.mxu1 %v3004_v9  ;;  %2242 = vmatpush1.msk.msra.mxu0 %vm122_vm0, %v87_v4  ;;  %v305_v20 = vld [vmem:[%s3523_s3 + $0x10] sm:$0xff]  ;;  %v3043_v21 = vpack.c.bf16 %v312_v19, %v309_v18  ;;  %v308_v22 = vld [vmem:[%s3523_s3 + $0x28] sm:$0xff]  ;;  %v314_v25 = vld [vmem:[%s3523_s3 + $0x58] sm:$0xff] }
  0x51   :  { %333 = vmatpush1.bf16.msra.mxu1 %v3017_v13  ;;  %2243 = vmatmul.mubr.msk.f32.vlgmr.msra.gmra.mrb[0].mxu0 %vm109_vm1, %v83_v3  ;;  %v3050_v23 = vpack.c.bf16 %v308_v22, %v305_v20  ;;  %v3066_v26 = vpack.c.bf16 %v314_v25, %v311_v24  ;;  %v3095_v31 = vld [vmem:[#allocation4] sm:$0x7] }
  0x52   :  { %334 = vmatprep.subr.bf16.mxu1 %v3030_v17  ;;  %2373 = vmatmul.mubr.msk.f32.gmra.mrb[2].mxu1 %vm109_vm1, %v86_v14  ;;  %v94_v36 = vrot.slane %v3095_v31, %v93_v29  ;;  %v98_v38 = vrot.slane %v3095_v31, %v97_v32 }
  0x53   :  { %199 = vmatprep.mubr.f32.mxu0 %v2878_v0  ;;  %364 = vmatprep.mubr.bf16.mxu1 %v2879_v1 }
  0x54   :  { %2375 = vmatprep.subr.bf16.mxu0 %v2878_v0 }
  0x55   :  { %335 = vmatpush1.bf16.msra.mxu1 %v3043_v21  ;;  %2244 = vmatmul.mubr.msk.f32.gmra.mrb[2].mxu0 %vm109_vm1, %v84_v6 }
  0x56   :  { %205 = vmatprep.mubr.f32.mxu0 %v2878_v0  ;;  %2376 = vmatpush3.bf16.msra.mxu0 %v3050_v23 }
  0x57   :  { %2377 = vmatprep.subr.bf16.mxu0 %v2878_v0  ;;  %547 = vmatprep.subr.bf16.mxu1 %v3004_v9 }
  0x58   :  { %365 = vmatmul.mubr.bf16.vlgmr.msra.gmra.mrb[4].mxu1 %v2879_v1 }
  0x59   :  { %2245 = vmatmul.mubr.msk.f32.gmra.mrb[4].mxu0 %vm109_vm1, %v85_v12  ;;  %548 = vmatpush1.bf16.msra.mxu1 %v3017_v13 }
  0x5a   :  { %211 = vmatprep.mubr.f32.mxu0 %v2878_v0  ;;  %2378 = vmatpush3.bf16.msra.mxu0 %v3066_v26 }
  0x5b   :  { %2383 = vmatprep.subr.bf16.mxu0 %v2878_v0  ;;  %549 = vmatprep.subr.bf16.mxu1 %v3030_v17 }
  0x5c   :  { %579 = vmatprep.mubr.bf16.mxu1 %v2879_v1 }
  0x5d   :  { %2246 = vmatmul.mubr.msk.f32.gmra.mrb[6].mxu0 %vm109_vm1, %v86_v14  ;;  %550 = vmatpush1.bf16.msra.mxu1 %v3043_v21 }
  0x5e   :  { %2379 = vmatprep.mubr.msk.bf16.mxu0 %vm2880_vm2, %v2878_v0  ;;  %771 = vmatprep.subr.bf16.mxu1 %v3004_v9 }
  0x61   :  { %2380 = vmatmul.mubr.bf16.vlgmr.msra.gmra.mrb[8].mxu0 %v2879_v1 }
  0x62   :  { %2384 = vmatpush3.bf16.msra.mxu0 %v3050_v23  ;;  %2387 = vmatprep.mubr.msk.bf16.mxu0 %vm2880_vm2, %v2878_v0 }
  0x63   :  { %2385 = vmatprep.subr.bf16.mxu0 %v2878_v0 }
  0x66   :  { %2386 = vmatpush3.bf16.msra.mxu0 %v3066_v26 }
  0x67   :  { %2391 = vmatprep.subr.bf16.mxu0 %v2878_v0 }
 0x121   :  { %v3093_v30 = vpop.f32.mrb[0].mxu1 }
 0x122   :  { %v3098_v33 = vpop.f32.mrb[1].mxu1 }
 0x124   :  { %v195_v34 = vpop.f32.mrb[0].mxu0 }
 0x125   :  { %v197_v35 = vpop.f32.mrb[1].mxu0  ;;  %v3101_v37 = vpop.f32.mrb[2].mxu1  ;;  %v3106_v42 = vadd.f32 %v195_v34, %v94_v36 }
 0x126   :  { %v3104_v39 = vpop.f32.mrb[3].mxu1  ;;  %v3108_v43 = vadd.f32 %v197_v35, %v98_v38 }
 0x128   :  { %v201_v40 = vpop.f32.mrb[2].mxu0 }
 0x129   :  { %v203_v41 = vpop.f32.mrb[3].mxu0  ;;  %v3110_v45 = vadd.f32 %v201_v40, %v94_v36 }
 0x12a   :  { %v3117_v59 = vadd.f32 %v203_v41, %v98_v38  ;;  %v101_v41 = vsub.s32 2, %v3090_v28 }
 0x12b   :  { %v366_v44 = vpop.f32.mrb[4].mxu1 }
 0x12c   :  { %v414_v46 = vrot.slane %v366_v44, 1  ;;  %v415_v47 = vrot.slane %v366_v44, 2  ;;  %v421_v48 = vadd.f32 %v366_v44, %v3106_v42  ;;  %v368_v49 = vpop.f32.mrb[5].mxu1  ;;  %v207_v50 = vpop.f32.mrb[4].mxu0  ;;  %v416_v3 = vrot.slane %v366_v44, 3 }
 0x12d   :  { %v450_v51 = vrot.slane %v368_v49, 1  ;;  %v209_v52 = vpop.f32.mrb[5].mxu0  ;;  %v370_v53 = vpop.f32.mrb[6].mxu1  ;;  %v457_v56 = vadd.f32 %v368_v49, %v3108_v43  ;;  %v3115_v57 = vadd.f32 %v207_v50, %v94_v36  ;;  %v451_v60 = vrot.slane %v368_v49, 2 }
 0x12e   :  { %v422_v54 = vadd.f32 %v414_v46, %v3110_v45  ;;  %v2253_v55 = vmul.f32 -1.442695, %v421_v48  ;;  %v371_v58 = vpop.f32.mrb[7].mxu1  ;;  %v3119_v62 = vadd.f32 %v209_v52, %v98_v38  ;;  %v452_v12 = vrot.slane %v368_v49, 3 }
 0x12f   :  { %v423_v2 = vadd.f32 %v415_v47, %v3115_v57  ;;  %v458_v4 = vadd.f32 %v450_v51, %v3117_v59  ;;  %v2257_v7 = vmul.f32 -1.442695, %v457_v56  ;;  %v102_v50 = vrot.slane %v3095_v31, %v101_v41 }
 0x130   :  { %2459 = vpow2.f32 %v2253_v55  ;;  %v2254_v61 = vmul.f32 -1.442695, %v422_v54  ;;  %v213_v63 = vpop.f32.mrb[6].mxu0  ;;  %v459_v14 = vadd.f32 %v451_v60, %v3119_v62 }
 0x131   :  { %v3123_v5 = vadd.f32 %v213_v63, %v94_v36  ;;  %v215_v6 = vpop.f32.mrb[7].mxu0  ;;  %v2255_v10 = vmul.f32 -1.442695, %v423_v2  ;;  %v2258_v16 = vmul.f32 -1.442695, %v458_v4  ;;  %v3139_v58 = vadd.f32 %v3098_v33, %v102_v50 }
 0x132   :  { %2461 = vpow2.f32 %v2254_v61  ;;  %v3125_v8 = vadd.f32 %v215_v6, %v98_v38  ;;  %v2259_v25 = vmul.f32 -1.442695, %v459_v14  ;;  %v3133_v38 = vld [vmem:[%s3525_s5] ss:$0 sm:$0xff]  ;;  %v3142_v2 = vadd.f32 %v3093_v30, %v102_v50 }
 0x133   :  { %v424_v11 = vadd.f32 %v416_v3, %v3123_v5  ;;  %2463 = vpow2.f32 %v2255_v10  ;;  %v3147_v33 = vadd.f32 %v3104_v39, %v102_v50  ;;  %v3150_v30 = vadd.f32 %v3101_v37, %v102_v50 }
 0x134   :  { %v407_v15 = vpop.f32.mrb[8].mxu0  ;;  %2465 = vpow2.f32 %v2257_v7  ;;  %v460_v20 = vadd.f32 %v452_v12, %v3125_v8 }
 0x135   :  { %v2256_v18 = vmul.f32 -1.442695, %v424_v11  ;;  %v2381_v19 = vpop.f32.mrb[9].mxu0  ;;  %v485_v48 = vadd.f32 %v3133_v38, %v407_v15 }
 0x136   :  { %v410_v22 = vpop.f32.mrb[10].mxu0  ;;  %v2260_v29 = vmul.f32 -1.442695, %v460_v20 }
 0x137   :  { %2467 = vpow2.f32 %v2256_v18  ;;  %v2382_v24 = vpop.f32.mrb[11].mxu0  ;;  %v487_v54 = vrot.slane %v485_v48, 1  ;;  %v488_v61 = vrot.slane %v485_v48, 2  ;;  %v489_v10 = vrot.slane %v485_v48, 3 }
 0x138   :  { %2469 = vpow2.f32 %v2258_v16 }
 0x139   :  { %2471 = vpow2.f32 %v2259_v25 }
 0x13a   :  { %v2460_v27 = vpop.eup %2459 }
 0x13b   :  { %v437_v32 = vadd.f32 1.0, %v2460_v27 }
 0x13c   :  { %v2462_v34 = vpop.eup %2461 }
 0x13d   :  { %v438_v35 = vadd.f32 1.0, %v2462_v34  ;;  %2473 = vrcp.f32 %v437_v32  ;;  %v2464_v36 = vpop.eup %2463 }
 0x13e   :  { %2475 = vpow2.f32 %v2260_v29  ;;  %v2466_v40 = vpop.eup %2465  ;;  %v439_v44 = vadd.f32 1.0, %v2464_v36 }
 0x13f   :  { %2477 = vrcp.f32 %v438_v35  ;;  %v473_v51 = vadd.f32 1.0, %v2466_v40 }
 0x140   :  { %2479 = vrcp.f32 %v439_v44 }
 0x141   :  { %v2468_v46 = vpop.eup %2467 }
 0x142   :  { %v440_v47 = vadd.f32 1.0, %v2468_v46  ;;  %v2470_v49 = vpop.eup %2469 }
 0x143   :  { %v2472_v52 = vpop.eup %2471  ;;  %v474_v53 = vadd.f32 1.0, %v2470_v49 }
 0x144   :  { %2481 = vrcp.f32 %v440_v47  ;;  %v475_v63 = vadd.f32 1.0, %v2472_v52 }
 0x145   :  { %2483 = vrcp.f32 %v473_v51 }
 0x146   :  { %2485 = vrcp.f32 %v474_v53 }
 0x147   :  { %v2474_v55 = vpop.eup %2473 }
 0x148   :  { %v2476_v56 = vpop.eup %2475  ;;  %v494_v28 = vmul.f32 %v2474_v55, %v485_v48 }
 0x149   :  { %v2478_v60 = vpop.eup %2477  ;;  %v476_v4 = vadd.f32 1.0, %v2476_v56 }
 0x14a   :  { %v495_v31 = vmul.f32 %v2478_v60, %v487_v54  ;;  %v498_v3 = vadd.f32 %v494_v28, %v3139_v58  ;;  %v2480_v6 = vpop.eup %2479 }
 0x14b   :  { %v496_v11 = vmul.f32 %v2480_v6, %v488_v61 }
 0x14c   :  { %v499_v7 = vadd.f32 %v495_v31, %v3142_v2  ;;  %2487 = vtanh.f32 %v498_v3 }
 0x14d   :  { %2489 = vrcp.f32 %v475_v63  ;;  %v500_v15 = vadd.f32 %v496_v11, %v3147_v33 }
 0x14e   :  { %v2482_v12 = vpop.eup %2481  ;;  %2491 = vtanh.f32 %v499_v7 }
 0x14f   :  { %v497_v14 = vmul.f32 %v2482_v12, %v489_v10  ;;  %2493 = vrcp.f32 %v476_v4  ;;  %v2484_v18 = vpop.eup %2483 }
 0x150   :  { %2495 = vtanh.f32 %v500_v15  ;;  %v2486_v19 = vpop.eup %2485  ;;  %v506_v39 = vsub.f32 1.0, %v2484_v18  ;;  %v514_v25 = vmul.f32 0.0, %v2484_v18 }
 0x151   :  { %v501_v16 = vadd.f32 %v497_v14, %v3150_v30  ;;  %v507_v24 = vsub.f32 1.0, %v2486_v19  ;;  %v515_v37 = vmul.f32 0.0, %v2486_v19 }
 0x153   :  { %2497 = vtanh.f32 %v501_v16 }
 0x156   :  { %v2488_v20 = vpop.eup %2487 }
 0x157   :  { %v2490_v22 = vpop.eup %2489  ;;  %v510_v27 = vmul.f32 %v2488_v20, %v506_v39 }
 0x158   :  { %v2492_v29 = vpop.eup %2491  ;;  %v508_v36 = vsub.f32 1.0, %v2490_v22  ;;  %v516_v47 = vmul.f32 0.0, %v2490_v22 }
 0x159   :  { %v2494_v32 = vpop.eup %2493  ;;  %v511_v34 = vmul.f32 %v2492_v29, %v507_v24  ;;  %v3154_v35 = vadd.f32 %v514_v25, %v510_v27 }
 0x15a   :  { %v2496_v40 = vpop.eup %2495  ;;  %v509_v44 = vsub.f32 1.0, %v2494_v32  ;;  %v517_v52 = vmul.f32 0.0, %v2494_v32 }
 0x15b   :  { %v3156_v41 = vadd.f32 %v515_v37, %v511_v34  ;;  %v512_v46 = vmul.f32 %v2496_v40, %v508_v36  ;;  %v522_v49 = vpack.c.bf16 %v3154_v35, %v3154_v35 }
 0x15d   :  { %v2498_v48 = vpop.eup %2497  ;;  %v523_v50 = vpack.c.bf16 %v3156_v41, %v3156_v41  ;;  %v3162_v53 = vadd.f32 %v516_v47, %v512_v46  ;;  %v530_v28 = vunpack.c.l.b16 %v522_v49 }
 0x15e   :  { %v513_v51 = vmul.f32 %v2498_v48, %v509_v44 }
 0x15f   :  { %v531_v54 = vunpack.c.l.b16 %v523_v50  ;;  %v524_v56 = vpack.c.bf16 %v3162_v53, %v3162_v53 }
 0x160   :  { %v3164_v55 = vadd.f32 %v517_v52, %v513_v51 }
 0x161   :  { %v534_v60 = vrot.slane %v531_v54, 7  ;;  %v532_v63 = vunpack.c.l.b16 %v524_v56 }
 0x162   :  { %v525_v61 = vpack.c.bf16 %v3164_v55, %v3164_v55 }
 0x163   :  { %v536_v31 = vsel %vm535_vm3, %v534_v60, %v530_v28  ;;  %v537_v4 = vrot.slane %v532_v63, 6 }
 0x164   :  { %v533_v3 = vunpack.c.l.b16 %v525_v61 }
 0x165   :  { %v539_v6 = vsel %vm538_vm4, %v537_v4, %v536_v31 }
 0x166   :  { %v540_v7 = vrot.slane %v533_v3, 5 }
 0x168   :  { %v542_v10 = vsel %vm541_vm5, %v540_v7, %v539_v6 }
 0x169   :  { %v543_v11 = vpack.c.b16 %v542_v10, %v542_v10 }
 0x16b   :  { %2261 = vmatmul.mubr.msk.bf16.vlgmr.msra.gmra.mrb[8].mxu1 %vm328_vm6, %v543_v11  ;;  %2388 = vmatmul.mubr.msk.bf16.vlgmr.msra.gmra.mrb[12].mxu0 %vm328_vm6, %v543_v11 }
 0x16c   :  { %772 = vmatpush1.bf16.msra.mxu1 %v3017_v13  ;;  %2392 = vmatpush3.bf16.msra.mxu0 %v3050_v23 }
 0x16d   :  { %773 = vmatprep.subr.bf16.mxu1 %v3030_v17  ;;  %2393 = vmatprep.subr.bf16.mxu0 %v2878_v0 }
 0x16e   :  { %803 = vmatprep.mubr.bf16.mxu1 %v2879_v1  ;;  %2395 = vmatprep.mubr.msk.bf16.mxu0 %vm2880_vm2, %v2878_v0 }
 0x170   :  { %774 = vmatpush1.bf16.msra.mxu1 %v3043_v21  ;;  %2394 = vmatpush3.bf16.msra.mxu0 %v3066_v26 }
 0x171   :  { %995 = vmatprep.subr.bf16.mxu1 %v3004_v9  ;;  %2399 = vmatprep.subr.bf16.mxu0 %v2878_v0 }
 0x23e   :  { %v581_v12 = vpop.f32.mrb[8].mxu1  ;;  %v622_v14 = vpop.f32.mrb[12].mxu0 }
 0x23f   :  { %v629_v15 = vrot.slane %v581_v12, 7  ;;  %v630_v16 = vrot.slane %v581_v12, 1  ;;  %v631_v18 = vrot.slane %v581_v12, 2  ;;  %v637_v19 = vadd.f32 %v581_v12, %v3110_v45  ;;  %v583_v39 = vpop.f32.mrb[9].mxu1  ;;  %v2389_v20 = vpop.f32.mrb[13].mxu0 }
 0x240   :  { %v665_v22 = vrot.slane %v583_v39, 7  ;;  %v666_v24 = vrot.slane %v583_v39, 1  ;;  %v667_v25 = vrot.slane %v583_v39, 2  ;;  %v585_v27 = vpop.f32.mrb[10].mxu1  ;;  %v625_v29 = vpop.f32.mrb[14].mxu0  ;;  %v673_v50 = vadd.f32 %v583_v39, %v3117_v59 }
 0x241   :  { %v636_v32 = vadd.f32 %v629_v15, %v3106_v42  ;;  %v638_v37 = vadd.f32 %v630_v16, %v3115_v57  ;;  %v639_v34 = vadd.f32 %v631_v18, %v3123_v5  ;;  %v2264_v36 = vmul.f32 -1.442695, %v637_v19  ;;  %v586_v40 = vpop.f32.mrb[11].mxu1  ;;  %v2390_v44 = vpop.f32.mrb[15].mxu0 }
 0x242   :  { %v672_v46 = vadd.f32 %v665_v22, %v3108_v43  ;;  %v674_v51 = vadd.f32 %v666_v24, %v3119_v62  ;;  %v675_v52 = vadd.f32 %v667_v25, %v3125_v8  ;;  %v2268_v56 = vmul.f32 -1.442695, %v673_v50 }
 0x243   :  { %v2263_v47 = vmul.f32 -1.442695, %v636_v32  ;;  %2499 = vpow2.f32 %v2264_v36  ;;  %v2265_v48 = vmul.f32 -1.442695, %v638_v37  ;;  %v2266_v49 = vmul.f32 -1.442695, %v639_v34 }
 0x244   :  { %v2267_v54 = vmul.f32 -1.442695, %v672_v46  ;;  %v2269_v28 = vmul.f32 -1.442695, %v674_v51  ;;  %v2270_v60 = vmul.f32 -1.442695, %v675_v52  ;;  %v700_v22 = vadd.f32 %v3133_v38, %v622_v14 }
 0x245   :  { %2501 = vpow2.f32 %v2263_v47  ;;  %v733_v47 = vrot.slane %v3154_v35, 7  ;;  %v734_v50 = vrot.slane %v3156_v41, 7  ;;  %v735_v52 = vrot.slane %v3162_v53, 7 }
 0x246   :  { %2503 = vpow2.f32 %v2265_v48  ;;  %v702_v25 = vrot.slane %v700_v22, 7  ;;  %v703_v32 = vrot.slane %v700_v22, 1  ;;  %v704_v34 = vrot.slane %v700_v22, 2 }
 0x247   :  { %2505 = vpow2.f32 %v2266_v49 }
 0x248   :  { %2507 = vpow2.f32 %v2267_v54 }
 0x249   :  { %2509 = vpow2.f32 %v2268_v56 }
 0x24a   :  { %2511 = vpow2.f32 %v2269_v28 }
 0x24b   :  { %2513 = vpow2.f32 %v2270_v60  ;;  %v736_v60 = vrot.slane %v3164_v55, 7 }
 0x24d   :  { %v2500_v61 = vpop.eup %2499 }
 0x24e   :  { %v653_v63 = vadd.f32 1.0, %v2500_v61 }
 0x24f   :  { %v2502_v31 = vpop.eup %2501 }
 0x250   :  { %v2504_v3 = vpop.eup %2503  ;;  %v652_v4 = vadd.f32 1.0, %v2502_v31  ;;  %2515 = vrcp.f32 %v653_v63 }
 0x251   :  { %v2506_v6 = vpop.eup %2505  ;;  %v654_v7 = vadd.f32 1.0, %v2504_v3 }
 0x252   :  { %v2508_v10 = vpop.eup %2507  ;;  %v655_v11 = vadd.f32 1.0, %v2506_v6  ;;  %2517 = vrcp.f32 %v652_v4 }
 0x253   :  { %v2510_v12 = vpop.eup %2509  ;;  %2519 = vrcp.f32 %v654_v7  ;;  %v688_v15 = vadd.f32 1.0, %v2508_v10 }
 0x254   :  { %v2512_v16 = vpop.eup %2511  ;;  %2521 = vrcp.f32 %v655_v11  ;;  %v689_v18 = vadd.f32 1.0, %v2510_v12 }
 0x255   :  { %v2514_v19 = vpop.eup %2513  ;;  %v690_v39 = vadd.f32 1.0, %v2512_v16  ;;  %2523 = vrcp.f32 %v688_v15 }
 0x256   :  { %v691_v20 = vadd.f32 1.0, %v2514_v19  ;;  %2525 = vrcp.f32 %v689_v18 }
 0x257   :  { %2527 = vrcp.f32 %v690_v39 }
 0x258   :  { %2529 = vrcp.f32 %v691_v20 }
 0x25a   :  { %v2516_v24 = vpop.eup %2515 }
 0x25b   :  { %v710_v27 = vmul.f32 %v2516_v24, %v700_v22 }
 0x25c   :  { %v2518_v29 = vpop.eup %2517 }
 0x25d   :  { %v2520_v37 = vpop.eup %2519  ;;  %v709_v36 = vmul.f32 %v2518_v29, %v702_v25  ;;  %v714_v40 = vadd.f32 %v710_v27, %v3142_v2 }
 0x25e   :  { %v2522_v44 = vpop.eup %2521  ;;  %v711_v46 = vmul.f32 %v2520_v37, %v703_v32 }
 0x25f   :  { %v2524_v48 = vpop.eup %2523  ;;  %v712_v49 = vmul.f32 %v2522_v44, %v704_v34  ;;  %v713_v14 = vadd.f32 %v709_v36, %v3139_v58  ;;  %2531 = vtanh.f32 %v714_v40 }
 0x260   :  { %v2526_v51 = vpop.eup %2525  ;;  %v715_v54 = vadd.f32 %v711_v46, %v3147_v33  ;;  %v741_v56 = vmul.f32 %v2524_v48, %v733_v47  ;;  %v721_v6 = vsub.f32 1.0, %v2524_v48 }
 0x261   :  { %v2528_v28 = vpop.eup %2527  ;;  %v716_v61 = vadd.f32 %v712_v49, %v3150_v30  ;;  %2533 = vtanh.f32 %v713_v14  ;;  %v742_v35 = vmul.f32 %v2526_v51, %v734_v50  ;;  %v722_v4 = vsub.f32 1.0, %v2526_v51 }
 0x262   :  { %v2530_v63 = vpop.eup %2529  ;;  %2535 = vtanh.f32 %v715_v54  ;;  %v743_v31 = vmul.f32 %v2528_v28, %v735_v52  ;;  %v723_v10 = vsub.f32 1.0, %v2528_v28 }
 0x263   :  { %2537 = vtanh.f32 %v716_v61  ;;  %v744_v3 = vmul.f32 %v2530_v63, %v736_v60  ;;  %v724_v12 = vsub.f32 1.0, %v2530_v63 }
 0x269   :  { %v2532_v41 = vpop.eup %2531 }
 0x26a   :  { %v726_v7 = vmul.f32 %v2532_v41, %v722_v4 }
 0x26b   :  { %v2534_v53 = vpop.eup %2533 }
 0x26c   :  { %v2536_v11 = vpop.eup %2535  ;;  %v725_v15 = vmul.f32 %v2534_v53, %v721_v6  ;;  %v3203_v16 = vadd.f32 %v742_v35, %v726_v7 }
 0x26d   :  { %v2538_v55 = vpop.eup %2537  ;;  %v727_v18 = vmul.f32 %v2536_v11, %v723_v10 }
 0x26e   :  { %v728_v19 = vmul.f32 %v2538_v55, %v724_v12  ;;  %v3205_v39 = vadd.f32 %v741_v56, %v725_v15  ;;  %v750_v25 = vpack.c.bf16 %v3203_v16, %v3203_v16 }
 0x26f   :  { %v3207_v20 = vadd.f32 %v743_v31, %v727_v18 }
 0x270   :  { %v3209_v22 = vadd.f32 %v744_v3, %v728_v19  ;;  %v749_v24 = vpack.c.bf16 %v3205_v39, %v3205_v39  ;;  %v758_v34 = vunpack.c.l.b16 %v750_v25 }
 0x271   :  { %v751_v27 = vpack.c.bf16 %v3207_v20, %v3207_v20 }
 0x272   :  { %v752_v29 = vpack.c.bf16 %v3209_v22, %v3209_v22  ;;  %v757_v32 = vunpack.c.l.b16 %v749_v24 }
 0x273   :  { %v759_v37 = vunpack.c.l.b16 %v751_v27 }
 0x274   :  { %v760_v36 = vunpack.c.l.b16 %v752_v29  ;;  %v761_v40 = vrot.slane %v757_v32, 1 }
 0x275   :  { %v763_v44 = vrot.slane %v759_v37, 7 }
 0x276   :  { %v762_v46 = vsel %vm535_vm3, %v758_v34, %v761_v40  ;;  %v765_v47 = vrot.slane %v760_v36, 6 }
 0x277   :  { %v764_v48 = vsel %vm538_vm4, %v763_v44, %v762_v46 }
 0x278   :  { %v766_v49 = vsel %vm541_vm5, %v765_v47, %v764_v48 }
 0x279   :  { %v767_v14 = vpack.c.b16 %v766_v49, %v766_v49 }
 0x27b   :  { %2271 = vmatmul.mubr.msk.bf16.vlgmr.msra.gmra.mrb[12].mxu1 %vm328_vm6, %v767_v14  ;;  %2396 = vmatmul.mubr.msk.bf16.vlgmr.msra.gmra.mrb[16].mxu0 %vm328_vm6, %v767_v14 }
 0x27c   :  { %996 = vmatpush1.bf16.msra.mxu1 %v3017_v13  ;;  %2400 = vmatpush3.bf16.msra.mxu0 %v3050_v23 }
 0x27d   :  { %997 = vmatprep.subr.bf16.mxu1 %v3030_v17  ;;  %2401 = vmatprep.subr.bf16.mxu0 %v2878_v0 }
 0x27e   :  { %1027 = vmatprep.mubr.bf16.mxu1 %v2879_v1  ;;  %2403 = vmatprep.mubr.msk.bf16.mxu0 %vm2880_vm2, %v2878_v0 }
 0x280   :  { %998 = vmatpush1.bf16.msra.mxu1 %v3043_v21  ;;  %2402 = vmatpush3.bf16.msra.mxu0 %v3066_v26 }
 0x281   :  { %1219 = vmatprep.subr.bf16.mxu1 %v3004_v9  ;;  %2407 = vmatprep.subr.bf16.mxu0 %v2878_v0 }
 0x34e   :  { %v805_v50 = vpop.f32.mrb[12].mxu1  ;;  %v846_v51 = vpop.f32.mrb[16].mxu0 }
 0x34f   :  { %v853_v52 = vrot.slane %v805_v50, 6  ;;  %v854_v54 = vrot.slane %v805_v50, 7  ;;  %v855_v56 = vrot.slane %v805_v50, 1  ;;  %v862_v28 = vadd.f32 %v805_v50, %v3115_v57  ;;  %v807_v60 = vpop.f32.mrb[13].mxu1  ;;  %v2397_v61 = vpop.f32.mrb[17].mxu0 }
 0x350   :  { %v889_v35 = vrot.slane %v807_v60, 6  ;;  %v890_v63 = vrot.slane %v807_v60, 7  ;;  %v891_v31 = vrot.slane %v807_v60, 1  ;;  %v809_v3 = vpop.f32.mrb[14].mxu1  ;;  %v849_v4 = vpop.f32.mrb[18].mxu0  ;;  %v898_v24 = vadd.f32 %v807_v60, %v3119_v62 }
 0x351   :  { %v860_v41 = vadd.f32 %v853_v52, %v3106_v42  ;;  %v861_v6 = vadd.f32 %v854_v54, %v3110_v45  ;;  %v863_v7 = vadd.f32 %v855_v56, %v3123_v5  ;;  %v2275_v53 = vmul.f32 -1.442695, %v862_v28  ;;  %v810_v10 = vpop.f32.mrb[15].mxu1  ;;  %v2398_v11 = vpop.f32.mrb[19].mxu0 }
 0x352   :  { %v896_v12 = vadd.f32 %v889_v35, %v3108_v43  ;;  %v897_v19 = vadd.f32 %v890_v63, %v3117_v59  ;;  %v899_v25 = vadd.f32 %v891_v31, %v3125_v8  ;;  %v2279_v32 = vmul.f32 -1.442695, %v898_v24 }
 0x353   :  { %v2273_v15 = vmul.f32 -1.442695, %v860_v41  ;;  %v2274_v55 = vmul.f32 -1.442695, %v861_v6  ;;  %2539 = vpow2.f32 %v2275_v53  ;;  %v2276_v18 = vmul.f32 -1.442695, %v863_v7 }
 0x354   :  { %v2277_v27 = vmul.f32 -1.442695, %v896_v12  ;;  %v2278_v29 = vmul.f32 -1.442695, %v897_v19  ;;  %v2280_v37 = vmul.f32 -1.442695, %v899_v25  ;;  %v924_v35 = vadd.f32 %v3133_v38, %v846_v51 }
 0x355   :  { %2541 = vpow2.f32 %v2273_v15  ;;  %v957_v15 = vrot.slane %v3205_v39, 7  ;;  %v958_v19 = vrot.slane %v3203_v16, 7 }
 0x356   :  { %2543 = vpow2.f32 %v2274_v55  ;;  %v926_v31 = vrot.slane %v924_v35, 6  ;;  %v927_v41 = vrot.slane %v924_v35, 7  ;;  %v928_v7 = vrot.slane %v924_v35, 1 }
 0x357   :  { %2545 = vpow2.f32 %v2276_v18 }
 0x358   :  { %2547 = vpow2.f32 %v2277_v27  ;;  %v959_v27 = vrot.slane %v3207_v20, 7 }
 0x359   :  { %2549 = vpow2.f32 %v2278_v29 }
 0x35a   :  { %2551 = vpow2.f32 %v2279_v32 }
 0x35b   :  { %2553 = vpow2.f32 %v2280_v37  ;;  %v960_v37 = vrot.slane %v3209_v22, 7 }
 0x35d   :  { %v2540_v34 = vpop.eup %2539 }
 0x35e   :  { %v878_v36 = vadd.f32 1.0, %v2540_v34 }
 0x35f   :  { %v2542_v40 = vpop.eup %2541 }
 0x360   :  { %v2544_v44 = vpop.eup %2543  ;;  %v876_v46 = vadd.f32 1.0, %v2542_v40  ;;  %2555 = vrcp.f32 %v878_v36 }
 0x361   :  { %v2546_v47 = vpop.eup %2545  ;;  %v877_v48 = vadd.f32 1.0, %v2544_v44 }
 0x362   :  { %v2548_v49 = vpop.eup %2547  ;;  %v879_v14 = vadd.f32 1.0, %v2546_v47  ;;  %2557 = vrcp.f32 %v876_v46 }
 0x363   :  { %v2550_v50 = vpop.eup %2549  ;;  %2559 = vrcp.f32 %v877_v48  ;;  %v912_v52 = vadd.f32 1.0, %v2548_v49 }
 0x364   :  { %v2552_v54 = vpop.eup %2551  ;;  %2561 = vrcp.f32 %v879_v14  ;;  %v913_v56 = vadd.f32 1.0, %v2550_v50 }
 0x365   :  { %v2554_v28 = vpop.eup %2553  ;;  %v914_v60 = vadd.f32 1.0, %v2552_v54  ;;  %2563 = vrcp.f32 %v912_v52 }
 0x366   :  { %v915_v61 = vadd.f32 1.0, %v2554_v28  ;;  %2565 = vrcp.f32 %v913_v56 }
 0x367   :  { %2567 = vrcp.f32 %v914_v60 }
 0x368   :  { %2569 = vrcp.f32 %v915_v61 }
 0x36a   :  { %v2556_v63 = vpop.eup %2555 }
 0x36b   :  { %v935_v3 = vmul.f32 %v2556_v63, %v924_v35 }
 0x36c   :  { %v2558_v4 = vpop.eup %2557 }
 0x36d   :  { %v2560_v6 = vpop.eup %2559  ;;  %v933_v53 = vmul.f32 %v2558_v4, %v926_v31  ;;  %v939_v10 = vadd.f32 %v935_v3, %v3147_v33 }
 0x36e   :  { %v2562_v11 = vpop.eup %2561  ;;  %v934_v12 = vmul.f32 %v2560_v6, %v927_v41 }
 0x36f   :  { %v2564_v55 = vpop.eup %2563  ;;  %v936_v18 = vmul.f32 %v2562_v11, %v928_v7  ;;  %v937_v51 = vadd.f32 %v933_v53, %v3139_v58  ;;  %2571 = vtanh.f32 %v939_v10 }
 0x370   :  { %v2566_v24 = vpop.eup %2565  ;;  %v938_v25 = vadd.f32 %v934_v12, %v3142_v2  ;;  %v965_v29 = vmul.f32 %v2564_v55, %v957_v15  ;;  %v945_v47 = vsub.f32 1.0, %v2564_v55 }
 0x371   :  { %v2568_v32 = vpop.eup %2567  ;;  %v940_v34 = vadd.f32 %v936_v18, %v3150_v30  ;;  %2573 = vtanh.f32 %v937_v51  ;;  %v966_v39 = vmul.f32 %v2566_v24, %v958_v19  ;;  %v946_v14 = vsub.f32 1.0, %v2566_v24 }
 0x372   :  { %v2570_v36 = vpop.eup %2569  ;;  %2575 = vtanh.f32 %v938_v25  ;;  %v967_v40 = vmul.f32 %v2568_v32, %v959_v27  ;;  %v947_v46 = vsub.f32 1.0, %v2568_v32 }
 0x373   :  { %2577 = vtanh.f32 %v940_v34  ;;  %v968_v44 = vmul.f32 %v2570_v36, %v960_v37  ;;  %v948_v50 = vsub.f32 1.0, %v2570_v36 }
 0x379   :  { %v2572_v16 = vpop.eup %2571 }
 0x37a   :  { %v951_v48 = vmul.f32 %v2572_v16, %v947_v46 }
 0x37b   :  { %v2574_v49 = vpop.eup %2573 }
 0x37c   :  { %v2576_v20 = vpop.eup %2575  ;;  %v949_v52 = vmul.f32 %v2574_v49, %v945_v47  ;;  %v3252_v54 = vadd.f32 %v967_v40, %v951_v48 }
 0x37d   :  { %v2578_v22 = vpop.eup %2577  ;;  %v950_v56 = vmul.f32 %v2576_v20, %v946_v14 }
 0x37e   :  { %v952_v28 = vmul.f32 %v2578_v22, %v948_v50  ;;  %v3254_v60 = vadd.f32 %v965_v29, %v949_v52  ;;  %v975_v3 = vpack.c.bf16 %v3252_v54, %v3252_v54 }
 0x37f   :  { %v3256_v61 = vadd.f32 %v966_v39, %v950_v56 }
 0x380   :  { %v3258_v35 = vadd.f32 %v968_v44, %v952_v28  ;;  %v973_v63 = vpack.c.bf16 %v3254_v60, %v3254_v60  ;;  %v983_v11 = vunpack.c.l.b16 %v975_v3 }
 0x381   :  { %v974_v31 = vpack.c.bf16 %v3256_v61, %v3256_v61 }
 0x382   :  { %v976_v4 = vpack.c.bf16 %v3258_v35, %v3258_v35  ;;  %v981_v41 = vunpack.c.l.b16 %v973_v63 }
 0x383   :  { %v982_v6 = vunpack.c.l.b16 %v974_v31 }
 0x384   :  { %v984_v7 = vunpack.c.l.b16 %v976_v4  ;;  %v985_v53 = vrot.slane %v981_v41, 2 }
 0x385   :  { %v986_v10 = vrot.slane %v982_v6, 1 }
 0x386   :  { %v989_v15 = vrot.slane %v984_v7, 7 }
 0x387   :  { %v987_v12 = vsel %vm535_vm3, %v986_v10, %v985_v53 }
 0x388   :  { %v988_v55 = vsel %vm538_vm4, %v983_v11, %v987_v12 }
 0x389   :  { %v990_v18 = vsel %vm541_vm5, %v989_v15, %v988_v55 }
 0x38a   :  { %v991_v51 = vpack.c.b16 %v990_v18, %v990_v18 }
 0x38c   :  { %2281 = vmatmul.mubr.msk.bf16.vlgmr.msra.gmra.mrb[16].mxu1 %vm328_vm6, %v991_v51  ;;  %2404 = vmatmul.mubr.msk.bf16.vlgmr.msra.gmra.mrb[20].mxu0 %vm328_vm6, %v991_v51 }
 0x38d   :  { %1220 = vmatpush1.bf16.msra.mxu1 %v3017_v13  ;;  %2408 = vmatpush3.bf16.msra.mxu0 %v3050_v23 }
 0x38e   :  { %1221 = vmatprep.subr.bf16.mxu1 %v3030_v17  ;;  %2409 = vmatprep.subr.bf16.mxu0 %v2878_v0 }
 0x38f   :  { %1251 = vmatprep.mubr.bf16.mxu1 %v2879_v1  ;;  %2411 = vmatprep.mubr.msk.bf16.mxu0 %vm2880_vm2, %v2878_v0 }
 0x391   :  { %1222 = vmatpush1.bf16.msra.mxu1 %v3043_v21  ;;  %2410 = vmatpush3.bf16.msra.mxu0 %v3066_v26 }
 0x392   :  { %1447 = vmatprep.subr.bf16.mxu1 %v3004_v9  ;;  %2415 = vmatprep.subr.bf16.mxu0 %v2878_v0 }
 0x45f   :  { %v1029_v19 = vpop.f32.mrb[16].mxu1  ;;  %v1070_v24 = vpop.f32.mrb[20].mxu0 }
 0x460   :  { %v1077_v25 = vrot.slane %v1029_v19, 5  ;;  %v1078_v27 = vrot.slane %v1029_v19, 6  ;;  %v1079_v29 = vrot.slane %v1029_v19, 7  ;;  %v1087_v32 = vadd.f32 %v1029_v19, %v3123_v5  ;;  %v1031_v37 = vpop.f32.mrb[17].mxu1  ;;  %v2405_v34 = vpop.f32.mrb[21].mxu0 }
 0x461   :  { %v1113_v39 = vrot.slane %v1031_v37, 5  ;;  %v1114_v36 = vrot.slane %v1031_v37, 6  ;;  %v1115_v40 = vrot.slane %v1031_v37, 7  ;;  %v1033_v44 = vpop.f32.mrb[18].mxu1  ;;  %v1073_v46 = vpop.f32.mrb[22].mxu0  ;;  %v1123_v31 = vadd.f32 %v1031_v37, %v3125_v8 }
 0x462   :  { %v1084_v16 = vadd.f32 %v1077_v25, %v3106_v42  ;;  %v1085_v47 = vadd.f32 %v1078_v27, %v3110_v45  ;;  %v1086_v48 = vadd.f32 %v1079_v29, %v3115_v57  ;;  %v2286_v49 = vmul.f32 -1.442695, %v1087_v32  ;;  %v1034_v14 = vpop.f32.mrb[19].mxu1  ;;  %v2406_v20 = vpop.f32.mrb[23].mxu0 }
 0x463   :  { %v1120_v50 = vadd.f32 %v1113_v39, %v3108_v43  ;;  %v1121_v28 = vadd.f32 %v1114_v36, %v3117_v59  ;;  %v1122_v63 = vadd.f32 %v1115_v40, %v3119_v62  ;;  %v2290_v6 = vmul.f32 -1.442695, %v1123_v31 }
 0x464   :  { %v2283_v52 = vmul.f32 -1.442695, %v1084_v16  ;;  %v2284_v22 = vmul.f32 -1.442695, %v1085_v47  ;;  %v2285_v56 = vmul.f32 -1.442695, %v1086_v48  ;;  %2579 = vpow2.f32 %v2286_v49 }
 0x465   :  { %v2287_v3 = vmul.f32 -1.442695, %v1120_v50  ;;  %v2288_v4 = vmul.f32 -1.442695, %v1121_v28  ;;  %v2289_v41 = vmul.f32 -1.442695, %v1122_v63  ;;  %v1148_v39 = vadd.f32 %v3133_v38, %v1070_v24 }
 0x466   :  { %2581 = vpow2.f32 %v2283_v52  ;;  %v1181_v52 = vrot.slane %v3254_v60, 7  ;;  %v1182_v24 = vrot.slane %v3256_v61, 7  ;;  %v1183_v63 = vrot.slane %v3252_v54, 7 }
 0x467   :  { %2583 = vpow2.f32 %v2284_v22  ;;  %v1150_v40 = vrot.slane %v1148_v39, 5  ;;  %v1151_v16 = vrot.slane %v1148_v39, 6  ;;  %v1152_v48 = vrot.slane %v1148_v39, 7 }
 0x468   :  { %2585 = vpow2.f32 %v2285_v56 }
 0x469   :  { %2587 = vpow2.f32 %v2287_v3 }
 0x46a   :  { %2589 = vpow2.f32 %v2288_v4 }
 0x46b   :  { %2591 = vpow2.f32 %v2289_v41  ;;  %v1184_v41 = vrot.slane %v3258_v35, 7 }
 0x46c   :  { %2593 = vpow2.f32 %v2290_v6 }
 0x46e   :  { %v2580_v7 = vpop.eup %2579 }
 0x46f   :  { %v1103_v53 = vadd.f32 1.0, %v2580_v7 }
 0x470   :  { %v2582_v10 = vpop.eup %2581 }
 0x471   :  { %v2584_v11 = vpop.eup %2583  ;;  %v1100_v12 = vadd.f32 1.0, %v2582_v10  ;;  %2595 = vrcp.f32 %v1103_v53 }
 0x472   :  { %v2586_v15 = vpop.eup %2585  ;;  %v1101_v55 = vadd.f32 1.0, %v2584_v11 }
 0x473   :  { %v2588_v18 = vpop.eup %2587  ;;  %v1102_v51 = vadd.f32 1.0, %v2586_v15  ;;  %2597 = vrcp.f32 %v1100_v12 }
 0x474   :  { %v2590_v19 = vpop.eup %2589  ;;  %2599 = vrcp.f32 %v1101_v55  ;;  %v1136_v25 = vadd.f32 1.0, %v2588_v18 }
 0x475   :  { %v2592_v27 = vpop.eup %2591  ;;  %2601 = vrcp.f32 %v1102_v51  ;;  %v1137_v29 = vadd.f32 1.0, %v2590_v19 }
 0x476   :  { %v2594_v32 = vpop.eup %2593  ;;  %v1138_v37 = vadd.f32 1.0, %v2592_v27  ;;  %2603 = vrcp.f32 %v1136_v25 }
 0x477   :  { %v1139_v34 = vadd.f32 1.0, %v2594_v32  ;;  %2605 = vrcp.f32 %v1137_v29 }
 0x478   :  { %2607 = vrcp.f32 %v1138_v37 }
 0x479   :  { %2609 = vrcp.f32 %v1139_v34 }
 0x47b   :  { %v2596_v36 = vpop.eup %2595 }
 0x47c   :  { %v1160_v44 = vmul.f32 %v2596_v36, %v1148_v39 }
 0x47d   :  { %v2598_v46 = vpop.eup %2597 }
 0x47e   :  { %v2600_v47 = vpop.eup %2599  ;;  %v1157_v49 = vmul.f32 %v2598_v46, %v1150_v40  ;;  %v1164_v14 = vadd.f32 %v1160_v44, %v3150_v30 }
 0x47f   :  { %v2602_v20 = vpop.eup %2601  ;;  %v1158_v50 = vmul.f32 %v2600_v47, %v1151_v16 }
 0x480   :  { %v2604_v22 = vpop.eup %2603  ;;  %v1159_v56 = vmul.f32 %v2602_v20, %v1152_v48  ;;  %v1161_v38 = vadd.f32 %v1157_v49, %v3139_v58  ;;  %2611 = vtanh.f32 %v1164_v14 }
 0x481   :  { %v2606_v28 = vpop.eup %2605  ;;  %v1162_v31 = vadd.f32 %v1158_v50, %v3142_v2  ;;  %v1189_v3 = vmul.f32 %v2604_v22, %v1181_v52  ;;  %v1169_v12 = vsub.f32 1.0, %v2604_v22 }
 0x482   :  { %v2608_v4 = vpop.eup %2607  ;;  %v1163_v6 = vadd.f32 %v1159_v56, %v3147_v33  ;;  %2613 = vtanh.f32 %v1161_v38  ;;  %v1190_v60 = vmul.f32 %v2606_v28, %v1182_v24  ;;  %v1170_v55 = vsub.f32 1.0, %v2606_v28 }
 0x483   :  { %v2610_v7 = vpop.eup %2609  ;;  %2615 = vtanh.f32 %v1162_v31  ;;  %v1191_v53 = vmul.f32 %v2608_v4, %v1183_v63  ;;  %v1171_v51 = vsub.f32 1.0, %v2608_v4 }
 0x484   :  { %2617 = vtanh.f32 %v1163_v6  ;;  %v1192_v10 = vmul.f32 %v2610_v7, %v1184_v41  ;;  %v1172_v11 = vsub.f32 1.0, %v2610_v7 }
 0x48a   :  { %v2612_v61 = vpop.eup %2611 }
 0x48b   :  { %v1176_v15 = vmul.f32 %v2612_v61, %v1172_v11 }
 0x48c   :  { %v2614_v54 = vpop.eup %2613 }
 0x48d   :  { %v2616_v18 = vpop.eup %2615  ;;  %v1173_v19 = vmul.f32 %v2614_v54, %v1169_v12  ;;  %v3301_v25 = vadd.f32 %v1192_v10, %v1176_v15 }
 0x48e   :  { %v2618_v35 = vpop.eup %2617  ;;  %v1174_v27 = vmul.f32 %v2616_v18, %v1170_v55 }
 0x48f   :  { %v1175_v29 = vmul.f32 %v2618_v35, %v1171_v51  ;;  %v3303_v32 = vadd.f32 %v1189_v3, %v1173_v19  ;;  %v1200_v46 = vpack.c.bf16 %v3301_v25, %v3301_v25 }
 0x490   :  { %v3305_v37 = vadd.f32 %v1190_v60, %v1174_v27 }
 0x491   :  { %v3307_v34 = vadd.f32 %v1191_v53, %v1175_v29  ;;  %v1197_v39 = vpack.c.bf16 %v3303_v32, %v3303_v32  ;;  %v1208_v20 = vunpack.c.l.b16 %v1200_v46 }
 0x492   :  { %v1198_v36 = vpack.c.bf16 %v3305_v37, %v3305_v37 }
 0x493   :  { %v1199_v40 = vpack.c.bf16 %v3307_v34, %v3307_v34  ;;  %v1205_v44 = vunpack.c.l.b16 %v1197_v39 }
 0x494   :  { %v1206_v16 = vunpack.c.l.b16 %v1198_v36 }
 0x495   :  { %v1207_v47 = vunpack.c.l.b16 %v1199_v40  ;;  %v1209_v48 = vrot.slane %v1205_v44, 3 }
 0x496   :  { %v1210_v49 = vrot.slane %v1206_v16, 2 }
 0x497   :  { %v1212_v14 = vrot.slane %v1207_v47, 1 }
 0x498   :  { %v1211_v50 = vsel %vm535_vm3, %v1210_v49, %v1209_v48 }
 0x499   :  { %v1213_v52 = vsel %vm538_vm4, %v1212_v14, %v1211_v50 }
 0x49a   :  { %v1214_v22 = vsel %vm541_vm5, %v1208_v20, %v1213_v52 }
 0x49b   :  { %v1215_v56 = vpack.c.b16 %v1214_v22, %v1214_v22 }
 0x49d   :  { %2291 = vmatmul.mubr.msk.bf16.vlgmr.msra.gmra.mrb[20].mxu1 %vm328_vm6, %v1215_v56  ;;  %2412 = vmatmul.mubr.msk.bf16.vlgmr.msra.gmra.mrb[24].mxu0 %vm328_vm6, %v1215_v56 }
 0x49e   :  { %1448 = vmatpush1.bf16.msra.mxu1 %v3017_v13  ;;  %2416 = vmatpush3.bf16.msra.mxu0 %v3050_v23 }
 0x49f   :  { %1449 = vmatprep.subr.bf16.mxu1 %v3030_v17  ;;  %2417 = vmatprep.subr.bf16.mxu0 %v2878_v0 }
 0x4a0   :  { %1479 = vmatprep.mubr.bf16.mxu1 %v2879_v1  ;;  %2419 = vmatprep.mubr.msk.bf16.mxu0 %vm2880_vm2, %v2878_v0 }
 0x4a2   :  { %1450 = vmatpush1.bf16.msra.mxu1 %v3043_v21  ;;  %2418 = vmatpush3.bf16.msra.mxu0 %v3066_v26 }
 0x4a3   :  { %1675 = vmatprep.subr.bf16.mxu1 %v3004_v9  ;;  %2423 = vmatprep.subr.bf16.mxu0 %v2878_v0 }
 0x570   :  { %v1253_v38 = vpop.f32.mrb[20].mxu1  ;;  %v1294_v24 = vpop.f32.mrb[24].mxu0 }
 0x571   :  { %v1301_v28 = vrot.slane %v1253_v38, 4  ;;  %v1302_v63 = vrot.slane %v1253_v38, 5  ;;  %v1303_v31 = vrot.slane %v1253_v38, 6  ;;  %v1304_v3 = vrot.slane %v1253_v38, 7  ;;  %v1255_v4 = vpop.f32.mrb[21].mxu1  ;;  %v2413_v41 = vpop.f32.mrb[25].mxu0 }
 0x572   :  { %v1338_v6 = vrot.slane %v1255_v4, 4  ;;  %v1339_v60 = vrot.slane %v1255_v4, 5  ;;  %v1340_v7 = vrot.slane %v1255_v4, 6  ;;  %v1257_v53 = vpop.f32.mrb[22].mxu1  ;;  %v1297_v10 = vpop.f32.mrb[26].mxu0  ;;  %v1341_v29 = vrot.slane %v1255_v4, 7 }
 0x573   :  { %v1309_v11 = vadd.f32 %v1301_v28, %v3106_v42  ;;  %v1310_v61 = vadd.f32 %v1302_v63, %v3110_v45  ;;  %v1311_v12 = vadd.f32 %v1303_v31, %v3115_v57  ;;  %v1312_v15 = vadd.f32 %v1304_v3, %v3123_v5  ;;  %v1258_v54 = vpop.f32.mrb[23].mxu1  ;;  %v2414_v55 = vpop.f32.mrb[27].mxu0 }
 0x574   :  { %v1346_v35 = vadd.f32 %v1338_v6, %v3108_v43  ;;  %v1347_v39 = vadd.f32 %v1339_v60, %v3117_v59  ;;  %v1348_v36 = vadd.f32 %v1340_v7, %v3119_v62  ;;  %v1349_v44 = vadd.f32 %v1341_v29, %v3125_v8  ;;  %v3344_v6 = vld [vmem:[%s3525_s5] ss:$0 sm:$0xff] }
 0x575   :  { %v2293_v18 = vmul.f32 -1.442695, %v1309_v11  ;;  %v2294_v51 = vmul.f32 -1.442695, %v1310_v61  ;;  %v2295_v19 = vmul.f32 -1.442695, %v1311_v12  ;;  %v1374_v60 = vadd.f32 %v3344_v6, %v1294_v24 }
 0x576   :  { %v2296_v27 = vmul.f32 -1.442695, %v1312_v15  ;;  %v2297_v40 = vmul.f32 -1.442695, %v1346_v35  ;;  %v2298_v46 = vmul.f32 -1.442695, %v1347_v39 }
 0x577   :  { %2619 = vpow2.f32 %v2293_v18  ;;  %v2299_v16 = vmul.f32 -1.442695, %v1348_v36  ;;  %v2300_v47 = vmul.f32 -1.442695, %v1349_v44  ;;  %v1376_v53 = vrot.slane %v1374_v60, 4 }
 0x578   :  { %2621 = vpow2.f32 %v2294_v51  ;;  %v1377_v11 = vrot.slane %v1374_v60, 5  ;;  %v1378_v12 = vrot.slane %v1374_v60, 6  ;;  %v1379_v55 = vrot.slane %v1374_v60, 7 }
 0x579   :  { %2623 = vpow2.f32 %v2295_v19  ;;  %v1409_v36 = vrot.slane %v3305_v37, 7  ;;  %v1410_v44 = vrot.slane %v3307_v34, 7 }
 0x57a   :  { %2625 = vpow2.f32 %v2296_v27  ;;  %v1408_v27 = vrot.slane %v3303_v32, 7 }
 0x57b   :  { %2627 = vpow2.f32 %v2297_v40 }
 0x57c   :  { %2629 = vpow2.f32 %v2298_v46 }
 0x57d   :  { %2631 = vpow2.f32 %v2299_v16 }
 0x57e   :  { %2633 = vpow2.f32 %v2300_v47 }
 0x581   :  { %v2620_v48 = vpop.eup %2619 }
 0x582   :  { %v2622_v49 = vpop.eup %2621  ;;  %v1325_v14 = vadd.f32 1.0, %v2620_v48  ;;  %v1411_v48 = vrot.slane %v3301_v25, 7 }
 0x583   :  { %v2624_v20 = vpop.eup %2623  ;;  %v1326_v50 = vadd.f32 1.0, %v2622_v49 }
 0x584   :  { %v2626_v52 = vpop.eup %2625  ;;  %v1327_v22 = vadd.f32 1.0, %v2624_v20  ;;  %2635 = vrcp.f32 %v1325_v14 }
 0x585   :  { %v2628_v56 = vpop.eup %2627  ;;  %v1328_v38 = vadd.f32 1.0, %v2626_v52  ;;  %2637 = vrcp.f32 %v1326_v50 }
 0x586   :  { %v2630_v28 = vpop.eup %2629  ;;  %2639 = vrcp.f32 %v1327_v22  ;;  %v1362_v63 = vadd.f32 1.0, %v2628_v56 }
 0x587   :  { %v2632_v31 = vpop.eup %2631  ;;  %2641 = vrcp.f32 %v1328_v38  ;;  %v1363_v3 = vadd.f32 1.0, %v2630_v28 }
 0x588   :  { %v2634_v4 = vpop.eup %2633  ;;  %v1364_v41 = vadd.f32 1.0, %v2632_v31  ;;  %2643 = vrcp.f32 %v1362_v63 }
 0x589   :  { %v1365_v7 = vadd.f32 1.0, %v2634_v4  ;;  %2645 = vrcp.f32 %v1363_v3 }
 0x58a   :  { %2647 = vrcp.f32 %v1364_v41 }
 0x58b   :  { %2649 = vrcp.f32 %v1365_v7 }
 0x58e   :  { %v2636_v10 = vpop.eup %2635 }
 0x58f   :  { %v2638_v61 = vpop.eup %2637  ;;  %v1384_v15 = vmul.f32 %v2636_v10, %v1376_v53 }
 0x590   :  { %v2640_v54 = vpop.eup %2639  ;;  %v1385_v18 = vmul.f32 %v2638_v61, %v1377_v11 }
 0x591   :  { %v2642_v51 = vpop.eup %2641  ;;  %v1386_v19 = vmul.f32 %v2640_v54, %v1378_v12  ;;  %v1388_v35 = vadd.f32 %v1384_v15, %v3139_v58 }
 0x592   :  { %v2644_v24 = vpop.eup %2643  ;;  %v1387_v29 = vmul.f32 %v2642_v51, %v1379_v55  ;;  %v1389_v39 = vadd.f32 %v1385_v18, %v3142_v2 }
 0x593   :  { %v2646_v40 = vpop.eup %2645  ;;  %v1390_v46 = vadd.f32 %v1386_v19, %v3147_v33  ;;  %2651 = vtanh.f32 %v1388_v35  ;;  %v1416_v16 = vmul.f32 %v2644_v24, %v1408_v27  ;;  %v1396_v37 = vsub.f32 1.0, %v2644_v24 }
 0x594   :  { %v2648_v47 = vpop.eup %2647  ;;  %v1391_v49 = vadd.f32 %v1387_v29, %v3150_v30  ;;  %2653 = vtanh.f32 %v1389_v39  ;;  %v1417_v32 = vmul.f32 %v2646_v40, %v1409_v36  ;;  %v1397_v22 = vsub.f32 1.0, %v2646_v40 }
 0x595   :  { %v2650_v14 = vpop.eup %2649  ;;  %2655 = vtanh.f32 %v1390_v46  ;;  %v1418_v20 = vmul.f32 %v2648_v47, %v1410_v44  ;;  %v1398_v56 = vsub.f32 1.0, %v2648_v47 }
 0x596   :  { %2657 = vtanh.f32 %v1391_v49  ;;  %v1419_v50 = vmul.f32 %v2650_v14, %v1411_v48  ;;  %v1399_v63 = vsub.f32 1.0, %v2650_v14 }
 0x59d   :  { %v2652_v52 = vpop.eup %2651 }
 0x59e   :  { %v2654_v34 = vpop.eup %2653  ;;  %v1400_v38 = vmul.f32 %v2652_v52, %v1396_v37 }
 0x59f   :  { %v2656_v28 = vpop.eup %2655  ;;  %v1401_v31 = vmul.f32 %v2654_v34, %v1397_v22 }
 0x5a0   :  { %v2658_v3 = vpop.eup %2657  ;;  %v1402_v25 = vmul.f32 %v2656_v28, %v1398_v56  ;;  %v3355_v4 = vadd.f32 %v1416_v16, %v1400_v38 }
 0x5a1   :  { %v1403_v41 = vmul.f32 %v2658_v3, %v1399_v63  ;;  %v3357_v60 = vadd.f32 %v1417_v32, %v1401_v31 }
 0x5a2   :  { %v3359_v7 = vadd.f32 %v1418_v20, %v1402_v25  ;;  %v1424_v53 = vpack.c.bf16 %v3355_v4, %v3355_v4 }
 0x5a3   :  { %v3363_v10 = vadd.f32 %v1419_v50, %v1403_v41  ;;  %v1425_v11 = vpack.c.bf16 %v3357_v60, %v3357_v60 }
 0x5a4   :  { %v1426_v61 = vpack.c.bf16 %v3359_v7, %v3359_v7  ;;  %v1432_v12 = vunpack.c.l.b16 %v1424_v53 }
 0x5a5   :  { %v1427_v15 = vpack.c.bf16 %v3363_v10, %v3363_v10  ;;  %v1433_v54 = vunpack.c.l.b16 %v1425_v11 }
 0x5a6   :  { %v1434_v55 = vunpack.c.l.b16 %v1426_v61  ;;  %v1436_v18 = vrot.slane %v1432_v12, 4 }
 0x5a7   :  { %v1435_v51 = vunpack.c.l.b16 %v1427_v15  ;;  %v1437_v19 = vrot.slane %v1433_v54, 3 }
 0x5a8   :  { %v1439_v35 = vrot.slane %v1434_v55, 2 }
 0x5a9   :  { %v1438_v27 = vsel %vm535_vm3, %v1437_v19, %v1436_v18  ;;  %v1441_v24 = vrot.slane %v1435_v51, 1 }
 0x5aa   :  { %v1440_v29 = vsel %vm538_vm4, %v1439_v35, %v1438_v27 }
 0x5ab   :  { %v1442_v39 = vsel %vm541_vm5, %v1441_v24, %v1440_v29 }
 0x5ac   :  { %v1443_v36 = vpack.c.b16 %v1442_v39, %v1442_v39 }
 0x5ae   :  { %2301 = vmatmul.mubr.msk.bf16.vlgmr.msra.gmra.mrb[24].mxu1 %vm328_vm6, %v1443_v36  ;;  %2420 = vmatmul.mubr.msk.bf16.vlgmr.msra.gmra.mrb[28].mxu0 %vm328_vm6, %v1443_v36 }
 0x5af   :  { %1676 = vmatpush1.bf16.msra.mxu1 %v3017_v13  ;;  %2424 = vmatpush3.bf16.msra.mxu0 %v3050_v23 }
 0x5b0   :  { %1677 = vmatprep.subr.bf16.mxu1 %v3030_v17  ;;  %2425 = vmatprep.subr.bf16.mxu0 %v2878_v0 }
 0x5b1   :  { %1707 = vmatprep.mubr.bf16.mxu1 %v2879_v1  ;;  %2427 = vmatprep.mubr.msk.bf16.mxu0 %vm2880_vm2, %v2878_v0 }
 0x5b3   :  { %1678 = vmatpush1.bf16.msra.mxu1 %v3043_v21  ;;  %2426 = vmatpush3.bf16.msra.mxu0 %v3066_v26 }
 0x5b4   :  { %1903 = vmatprep.subr.bf16.mxu1 %v3004_v9  ;;  %2431 = vmatprep.subr.bf16.mxu0 %v2878_v0 }
 0x681   :  { %v1481_v40 = vpop.f32.mrb[24].mxu1  ;;  %v1522_v44 = vpop.f32.mrb[28].mxu0 }
 0x682   :  { %v1529_v46 = vrot.slane %v1481_v40, 3  ;;  %v1530_v16 = vrot.slane %v1481_v40, 4  ;;  %v1531_v47 = vrot.slane %v1481_v40, 5  ;;  %v1532_v48 = vrot.slane %v1481_v40, 6  ;;  %v1483_v49 = vpop.f32.mrb[25].mxu1  ;;  %v2421_v32 = vpop.f32.mrb[29].mxu0 }
 0x683   :  { %v1566_v14 = vrot.slane %v1483_v49, 3  ;;  %v1567_v20 = vrot.slane %v1483_v49, 4  ;;  %v1568_v50 = vrot.slane %v1483_v49, 5  ;;  %v1485_v37 = vpop.f32.mrb[26].mxu1  ;;  %v1525_v52 = vpop.f32.mrb[30].mxu0  ;;  %v1569_v53 = vrot.slane %v1483_v49, 6 }
 0x684   :  { %v1537_v22 = vadd.f32 %v1529_v46, %v3106_v42  ;;  %v1538_v34 = vadd.f32 %v1530_v16, %v3110_v45  ;;  %v1539_v9 = vadd.f32 %v1531_v47, %v3115_v57  ;;  %v1540_v56 = vadd.f32 %v1532_v48, %v3123_v5  ;;  %v1486_v38 = vpop.f32.mrb[27].mxu1  ;;  %v2422_v28 = vpop.f32.mrb[31].mxu0 }
 0x685   :  { %v1574_v25 = vadd.f32 %v1566_v14, %v3108_v43  ;;  %v1575_v11 = vadd.f32 %v1567_v20, %v3117_v59  ;;  %v1576_v61 = vadd.f32 %v1568_v50, %v3119_v62  ;;  %v1577_v15 = vadd.f32 %v1569_v53, %v3125_v8 }
 0x686   :  { %v2303_v63 = vmul.f32 -1.442695, %v1537_v22  ;;  %v2304_v31 = vmul.f32 -1.442695, %v1538_v34  ;;  %v2305_v3 = vmul.f32 -1.442695, %v1539_v9  ;;  %v1602_v14 = vadd.f32 %v3344_v6, %v1522_v44 }
 0x687   :  { %v2306_v41 = vmul.f32 -1.442695, %v1540_v56  ;;  %v2307_v12 = vmul.f32 -1.442695, %v1574_v25  ;;  %v2308_v54 = vmul.f32 -1.442695, %v1575_v11 }
 0x688   :  { %2659 = vpow2.f32 %v2303_v63  ;;  %v2309_v55 = vmul.f32 -1.442695, %v1576_v61  ;;  %v2310_v18 = vmul.f32 -1.442695, %v1577_v15  ;;  %v1604_v50 = vrot.slane %v1602_v14, 3 }
 0x689   :  { %2661 = vpow2.f32 %v2304_v31  ;;  %v1605_v52 = vrot.slane %v1602_v14, 4  ;;  %v1606_v34 = vrot.slane %v1602_v14, 5  ;;  %v1607_v38 = vrot.slane %v1602_v14, 6 }
 0x68a   :  { %2663 = vpow2.f32 %v2305_v3  ;;  %v1636_v25 = vrot.slane %v3355_v4, 7  ;;  %v1637_v11 = vrot.slane %v3357_v60, 7 }
 0x68b   :  { %2665 = vpow2.f32 %v2306_v41 }
 0x68c   :  { %2667 = vpow2.f32 %v2307_v12  ;;  %v1638_v12 = vrot.slane %v3359_v7, 7 }
 0x68d   :  { %2669 = vpow2.f32 %v2308_v54 }
 0x68e   :  { %2671 = vpow2.f32 %v2309_v55 }
 0x68f   :  { %2673 = vpow2.f32 %v2310_v18  ;;  %v1639_v18 = vrot.slane %v3363_v10, 7 }
 0x692   :  { %v2660_v51 = vpop.eup %2659 }
 0x693   :  { %v2662_v19 = vpop.eup %2661  ;;  %v1553_v35 = vadd.f32 1.0, %v2660_v51 }
 0x694   :  { %v2664_v27 = vpop.eup %2663  ;;  %v1554_v24 = vadd.f32 1.0, %v2662_v19 }
 0x695   :  { %v2666_v29 = vpop.eup %2665  ;;  %v1555_v39 = vadd.f32 1.0, %v2664_v27  ;;  %2675 = vrcp.f32 %v1553_v35 }
 0x696   :  { %v2668_v36 = vpop.eup %2667  ;;  %v1556_v40 = vadd.f32 1.0, %v2666_v29  ;;  %2677 = vrcp.f32 %v1554_v24 }
 0x697   :  { %v2670_v46 = vpop.eup %2669  ;;  %2679 = vrcp.f32 %v1555_v39  ;;  %v1590_v16 = vadd.f32 1.0, %v2668_v36 }
 0x698   :  { %v2672_v47 = vpop.eup %2671  ;;  %2681 = vrcp.f32 %v1556_v40  ;;  %v1591_v48 = vadd.f32 1.0, %v2670_v46 }
 0x699   :  { %v2674_v49 = vpop.eup %2673  ;;  %v1592_v32 = vadd.f32 1.0, %v2672_v47  ;;  %2683 = vrcp.f32 %v1590_v16 }
 0x69a   :  { %v1593_v20 = vadd.f32 1.0, %v2674_v49  ;;  %2685 = vrcp.f32 %v1591_v48 }
 0x69b   :  { %2687 = vrcp.f32 %v1592_v32 }
 0x69c   :  { %2689 = vrcp.f32 %v1593_v20 }
 0x69f   :  { %v2676_v37 = vpop.eup %2675 }
 0x6a0   :  { %v2678_v22 = vpop.eup %2677  ;;  %v1612_v9 = vmul.f32 %v2676_v37, %v1604_v50 }
 0x6a1   :  { %v2680_v56 = vpop.eup %2679  ;;  %v1613_v28 = vmul.f32 %v2678_v22, %v1605_v52 }
 0x6a2   :  { %v2682_v63 = vpop.eup %2681  ;;  %v1614_v31 = vmul.f32 %v2680_v56, %v1606_v34  ;;  %v1616_v3 = vadd.f32 %v1612_v9, %v3139_v58 }
 0x6a3   :  { %v2684_v44 = vpop.eup %2683  ;;  %v1615_v41 = vmul.f32 %v2682_v63, %v1607_v38  ;;  %v1617_v53 = vadd.f32 %v1613_v28, %v3142_v2 }
 0x6a4   :  { %v2686_v61 = vpop.eup %2685  ;;  %v1618_v15 = vadd.f32 %v1614_v31, %v3147_v33  ;;  %2691 = vtanh.f32 %v1616_v3  ;;  %v1644_v54 = vmul.f32 %v2684_v44, %v1636_v25  ;;  %v1624_v60 = vsub.f32 1.0, %v2684_v44 }
 0x6a5   :  { %v2688_v55 = vpop.eup %2687  ;;  %v1619_v51 = vadd.f32 %v1615_v41, %v3150_v30  ;;  %2693 = vtanh.f32 %v1617_v53  ;;  %v1645_v4 = vmul.f32 %v2686_v61, %v1637_v11  ;;  %v1625_v29 = vsub.f32 1.0, %v2686_v61 }
 0x6a6   :  { %v2690_v19 = vpop.eup %2689  ;;  %2695 = vtanh.f32 %v1618_v15  ;;  %v1646_v35 = vmul.f32 %v2688_v55, %v1638_v12  ;;  %v1626_v39 = vsub.f32 1.0, %v2688_v55 }
 0x6a7   :  { %2697 = vtanh.f32 %v1619_v51  ;;  %v1647_v27 = vmul.f32 %v2690_v19, %v1639_v18  ;;  %v1627_v46 = vsub.f32 1.0, %v2690_v19 }
 0x6ae   :  { %v2692_v24 = vpop.eup %2691 }
 0x6af   :  { %v2694_v7 = vpop.eup %2693  ;;  %v1628_v36 = vmul.f32 %v2692_v24, %v1624_v60 }
 0x6b0   :  { %v2696_v40 = vpop.eup %2695  ;;  %v1629_v16 = vmul.f32 %v2694_v7, %v1625_v29 }
 0x6b1   :  { %v2698_v47 = vpop.eup %2697  ;;  %v1630_v10 = vmul.f32 %v2696_v40, %v1626_v39  ;;  %v3404_v48 = vadd.f32 %v1644_v54, %v1628_v36 }
 0x6b2   :  { %v1631_v49 = vmul.f32 %v2698_v47, %v1627_v46  ;;  %v3406_v32 = vadd.f32 %v1645_v4, %v1629_v16 }
 0x6b3   :  { %v3408_v14 = vadd.f32 %v1646_v35, %v1630_v10  ;;  %v1652_v20 = vpack.c.bf16 %v3404_v48, %v3404_v48 }
 0x6b4   :  { %v3412_v50 = vadd.f32 %v1647_v27, %v1631_v49  ;;  %v1653_v37 = vpack.c.bf16 %v3406_v32, %v3406_v32 }
 0x6b5   :  { %v1654_v52 = vpack.c.bf16 %v3408_v14, %v3408_v14  ;;  %v1660_v22 = vunpack.c.l.b16 %v1652_v20 }
 0x6b6   :  { %v1655_v34 = vpack.c.bf16 %v3412_v50, %v3412_v50  ;;  %v1661_v9 = vunpack.c.l.b16 %v1653_v37 }
 0x6b7   :  { %v1662_v56 = vunpack.c.l.b16 %v1654_v52  ;;  %v1664_v38 = vrot.slane %v1660_v22, 5 }
 0x6b8   :  { %v1663_v28 = vunpack.c.l.b16 %v1655_v34  ;;  %v1665_v63 = vrot.slane %v1661_v9, 4 }
 0x6b9   :  { %v1667_v31 = vrot.slane %v1662_v56, 3 }
 0x6ba   :  { %v1666_v3 = vsel %vm535_vm3, %v1665_v63, %v1664_v38  ;;  %v1669_v25 = vrot.slane %v1663_v28, 2 }
 0x6bb   :  { %v1668_v44 = vsel %vm538_vm4, %v1667_v31, %v1666_v3 }
 0x6bc   :  { %v1670_v41 = vsel %vm541_vm5, %v1669_v25, %v1668_v44 }
 0x6bd   :  { %v1671_v53 = vpack.c.b16 %v1670_v41, %v1670_v41 }
 0x6bf   :  { %2311 = vmatmul.mubr.msk.bf16.vlgmr.msra.gmra.mrb[28].mxu1 %vm328_vm6, %v1671_v53  ;;  %2428 = vmatmul.mubr.msk.bf16.vlgmr.msra.gmra.mrb[32].mxu0 %vm328_vm6, %v1671_v53 }
 0x6c0   :  { %1904 = vmatpush1.bf16.msra.mxu1 %v3017_v13  ;;  %2432 = vmatpush3.bf16.msra.mxu0 %v3050_v23 }
 0x6c1   :  { %1905 = vmatprep.subr.bf16.mxu1 %v3030_v17  ;;  %2433 = vmatprep.subr.bf16.mxu0 %v2878_v0 }
 0x6c2   :  { %1935 = vmatprep.mubr.bf16.mxu1 %v2879_v1  ;;  %2435 = vmatprep.mubr.msk.bf16.mxu0 %vm2880_vm2, %v2878_v0 }
 0x6c4   :  { %1906 = vmatpush1.bf16.msra.mxu1 %v3043_v21  ;;  %2434 = vmatpush3.bf16.msra.mxu0 %v3066_v26 }
 0x6c5   :  { %2439 = vmatprep.subr.bf16.mxu1 %v2878_v0 }
 0x792   :  { %v1709_v11 = vpop.f32.mrb[28].mxu1  ;;  %v1750_v61 = vpop.f32.mrb[32].mxu0 }
 0x793   :  { %v1757_v13 = vrot.slane %v1709_v11, 2  ;;  %v1758_v12 = vrot.slane %v1709_v11, 3  ;;  %v1759_v23 = vrot.slane %v1709_v11, 4  ;;  %v1760_v15 = vrot.slane %v1709_v11, 5  ;;  %v1711_v17 = vpop.f32.mrb[29].mxu1  ;;  %v2429_v54 = vpop.f32.mrb[33].mxu0 }
 0x794   :  { %v1794_v55 = vrot.slane %v1711_v17, 2  ;;  %v1795_v18 = vrot.slane %v1711_v17, 3  ;;  %v1796_v1 = vrot.slane %v1711_v17, 4  ;;  %v1713_v51 = vpop.f32.mrb[30].mxu1  ;;  %v1753_v4 = vpop.f32.mrb[34].mxu0  ;;  %v1797_v40 = vrot.slane %v1711_v17, 5 }
 0x795   :  { %v1765_v19 = vadd.f32 %v1757_v13, %v3106_v42  ;;  %v1766_v21 = vadd.f32 %v1758_v12, %v3110_v45  ;;  %v1767_v26 = vadd.f32 %v1759_v23, %v3115_v57  ;;  %v1768_v35 = vadd.f32 %v1760_v15, %v3123_v5  ;;  %v1714_v27 = vpop.f32.mrb[31].mxu1  ;;  %v2430_v60 = vpop.f32.mrb[35].mxu0 }
 0x796   :  { %v1802_v39 = vadd.f32 %v1794_v55, %v3108_v43  ;;  %v1803_v46 = vadd.f32 %v1795_v18, %v3117_v59  ;;  %v1804_v16 = vadd.f32 %v1796_v1, %v3119_v62  ;;  %v1805_v10 = vadd.f32 %v1797_v40, %v3125_v8 }
 0x797   :  { %v2313_v24 = vmul.f32 -1.442695, %v1765_v19  ;;  %v2314_v29 = vmul.f32 -1.442695, %v1766_v21  ;;  %v2315_v7 = vmul.f32 -1.442695, %v1767_v26  ;;  %v1830_v13 = vadd.f32 %v3344_v6, %v1750_v61 }
 0x798   :  { %v2316_v36 = vmul.f32 -1.442695, %v1768_v35  ;;  %v2317_v47 = vmul.f32 -1.442695, %v1802_v39  ;;  %v2318_v49 = vmul.f32 -1.442695, %v1803_v46 }
 0x799   :  { %2699 = vpow2.f32 %v2313_v24  ;;  %v2319_v20 = vmul.f32 -1.442695, %v1804_v16  ;;  %v2320_v37 = vmul.f32 -1.442695, %v1805_v10  ;;  %v1832_v23 = vrot.slane %v1830_v13, 2 }
 0x79a   :  { %2701 = vpow2.f32 %v2314_v29  ;;  %v1833_v17 = vrot.slane %v1830_v13, 3  ;;  %v1834_v55 = vrot.slane %v1830_v13, 4  ;;  %v1835_v51 = vrot.slane %v1830_v13, 5 }
 0x79b   :  { %2703 = vpow2.f32 %v2315_v7  ;;  %v1864_v35 = vrot.slane %v3404_v48, 7  ;;  %v1865_v24 = vrot.slane %v3406_v32, 7  ;;  %v1866_v7 = vrot.slane %v3408_v14, 7 }
 0x79c   :  { %2705 = vpow2.f32 %v2316_v36  ;;  %v1867_v46 = vrot.slane %v3412_v50, 7 }
 0x79d   :  { %2707 = vpow2.f32 %v2317_v47 }
 0x79e   :  { %2709 = vpow2.f32 %v2318_v49 }
 0x79f   :  { %2711 = vpow2.f32 %v2319_v20 }
 0x7a0   :  { %2713 = vpow2.f32 %v2320_v37 }
 0x7a3   :  { %v2700_v52 = vpop.eup %2699 }
 0x7a4   :  { %v2702_v22 = vpop.eup %2701  ;;  %v1781_v34 = vadd.f32 1.0, %v2700_v52 }
 0x7a5   :  { %v2704_v9 = vpop.eup %2703  ;;  %v1782_v56 = vadd.f32 1.0, %v2702_v22 }
 0x7a6   :  { %v2706_v38 = vpop.eup %2705  ;;  %v1783_v28 = vadd.f32 1.0, %v2704_v9  ;;  %2715 = vrcp.f32 %v1781_v34 }
 0x7a7   :  { %v2708_v63 = vpop.eup %2707  ;;  %v1784_v31 = vadd.f32 1.0, %v2706_v38  ;;  %2717 = vrcp.f32 %v1782_v56 }
 0x7a8   :  { %v2710_v3 = vpop.eup %2709  ;;  %2719 = vrcp.f32 %v1783_v28  ;;  %v1818_v25 = vadd.f32 1.0, %v2708_v63 }
 0x7a9   :  { %v2712_v44 = vpop.eup %2711  ;;  %2721 = vrcp.f32 %v1784_v31  ;;  %v1819_v41 = vadd.f32 1.0, %v2710_v3 }
 0x7aa   :  { %v2714_v53 = vpop.eup %2713  ;;  %v1820_v11 = vadd.f32 1.0, %v2712_v44  ;;  %2723 = vrcp.f32 %v1818_v25 }
 0x7ab   :  { %v1821_v12 = vadd.f32 1.0, %v2714_v53  ;;  %2725 = vrcp.f32 %v1819_v41 }
 0x7ac   :  { %2727 = vrcp.f32 %v1820_v11 }
 0x7ad   :  { %2729 = vrcp.f32 %v1821_v12 }
 0x7b0   :  { %v2716_v15 = vpop.eup %2715 }
 0x7b1   :  { %v2718_v54 = vpop.eup %2717  ;;  %v1840_v18 = vmul.f32 %v2716_v15, %v1832_v23 }
 0x7b2   :  { %v2720_v1 = vpop.eup %2719  ;;  %v1841_v4 = vmul.f32 %v2718_v54, %v1833_v17 }
 0x7b3   :  { %v2722_v19 = vpop.eup %2721  ;;  %v1842_v21 = vmul.f32 %v2720_v1, %v1834_v55  ;;  %v1844_v26 = vadd.f32 %v1840_v18, %v3139_v58 }
 0x7b4   :  { %v2724_v61 = vpop.eup %2723  ;;  %v1843_v27 = vmul.f32 %v2722_v19, %v1835_v51  ;;  %v1845_v60 = vadd.f32 %v1841_v4, %v3142_v2 }
 0x7b5   :  { %v2726_v29 = vpop.eup %2725  ;;  %v1846_v39 = vadd.f32 %v1842_v21, %v3147_v33  ;;  %2731 = vtanh.f32 %v1844_v26  ;;  %v1872_v36 = vmul.f32 %v2724_v61, %v1864_v35  ;;  %v1852_v32 = vsub.f32 1.0, %v2724_v61  ;;  %v2177_v21 = vld [vmem:[%s3521_s1] sm:$0x3]  ;;  %v2113_v35 = vld [vmem:[%s3526_s6 + $0x8] sm:$0xff]  ;;  %s2881_s1 = smov 32  }
 0x7b6   :  { %v2728_v40 = vpop.eup %2727  ;;  %v1847_v16 = vadd.f32 %v1843_v27, %v3150_v30  ;;  %2733 = vtanh.f32 %v1845_v60  ;;  %v1873_v48 = vmul.f32 %v2726_v29, %v1865_v24  ;;  %v1853_v37 = vsub.f32 1.0, %v2726_v29  ;;  %v2112_v26 = vld [vmem:[%s3526_s6] sm:$0xff]  ;;  %2181 = vperm.xlu1 %2456, %v2177_v21   ;;  %v2114_v27 = vld [vmem:[%s3526_s6 + $0x10] sm:$0xff]  ;;  %v2115_v60 = vld [vmem:[%s3526_s6 + $0x18] sm:$0xff]  ;;  %s2882_s6 = smov 125  }
 0x7b7   :  { %v2730_v47 = vpop.eup %2729  ;;  %2735 = vtanh.f32 %v1846_v39  ;;  %v1874_v10 = vmul.f32 %v2728_v40, %v1866_v7  ;;  %v1854_v52 = vsub.f32 1.0, %v2728_v40  ;;  %v2116_v61 = vpack.c.bf16 %v2113_v35, %v2112_v26 }
 0x7b8   :  { %2737 = vtanh.f32 %v1847_v16  ;;  %v1875_v49 = vmul.f32 %v2730_v47, %v1867_v46  ;;  %v1855_v9 = vsub.f32 1.0, %v2730_v47  ;;  %v2117_v24 = vpack.c.bf16 %v2115_v60, %v2114_v27 }
 0x7bf   :  { %v2732_v20 = vpop.eup %2731 }
 0x7c0   :  { %v2734_v14 = vpop.eup %2733  ;;  %v1856_v22 = vmul.f32 %v2732_v20, %v1852_v32 }
 0x7c1   :  { %v2736_v34 = vpop.eup %2735  ;;  %v1857_v56 = vmul.f32 %v2734_v14, %v1853_v37 }
 0x7c2   :  { %v2738_v38 = vpop.eup %2737  ;;  %v1858_v50 = vmul.f32 %v2736_v34, %v1854_v52  ;;  %v3452_v28 = vadd.f32 %v1872_v36, %v1856_v22 }
 0x7c3   :  { %v1859_v63 = vmul.f32 %v2738_v38, %v1855_v9  ;;  %v3454_v31 = vadd.f32 %v1873_v48, %v1857_v56 }
 0x7c4   :  { %v3456_v3 = vadd.f32 %v1874_v10, %v1858_v50  ;;  %v1880_v25 = vpack.c.bf16 %v3452_v28, %v3452_v28 }
 0x7c5   :  { %v3460_v44 = vadd.f32 %v1875_v49, %v1859_v63  ;;  %v1881_v41 = vpack.c.bf16 %v3454_v31, %v3454_v31 }
 0x7c6   :  { %v1882_v53 = vpack.c.bf16 %v3456_v3, %v3456_v3  ;;  %v1888_v11 = vunpack.c.l.b16 %v1880_v25 }
 0x7c7   :  { %v1883_v13 = vpack.c.bf16 %v3460_v44, %v3460_v44  ;;  %v1889_v12 = vunpack.c.l.b16 %v1881_v41 }
 0x7c8   :  { %v1890_v23 = vunpack.c.l.b16 %v1882_v53  ;;  %v1892_v15 = vrot.slane %v1888_v11, 6 }
 0x7c9   :  { %v1891_v17 = vunpack.c.l.b16 %v1883_v13  ;;  %v1893_v54 = vrot.slane %v1889_v12, 5 }
 0x7ca   :  { %v1895_v55 = vrot.slane %v1890_v23, 4 }
 0x7cb   :  { %v1894_v18 = vsel %vm535_vm3, %v1893_v54, %v1892_v15  ;;  %v1897_v1 = vrot.slane %v1891_v17, 3 }
 0x7cc   :  { %v1896_v51 = vsel %vm538_vm4, %v1895_v55, %v1894_v18 }
 0x7cd   :  { %v1898_v4 = vsel %vm541_vm5, %v1897_v1, %v1896_v51 }
 0x7ce   :  { %v1899_v19 = vpack.c.b16 %v1898_v4, %v1898_v4 }
 0x7d0   :  { %2321 = vmatmul.mubr.msk.bf16.vlgmr.msra.gmra.mrb[32].mxu1 %vm328_vm6, %v1899_v19  ;;  %2436 = vmatmul.mubr.msk.bf16.vlgmr.msra.gmra.mrb[36].mxu0 %vm328_vm6, %v1899_v19 }
 0x7d1   :  { %2443 = vmatprep.mubr.msk.bf16.mxu1 %vm2880_vm2, %v2878_v0  ;;  %2440 = vmatpush3.bf16.msra.mxu1 %v2116_v61 }
 0x7d2   :  { %2441 = vmatprep.subr.bf16.mxu1 %v2878_v0 }
 0x7d5   :  { %2442 = vmatpush3.bf16.msra.mxu1 %v2117_v24 }
 0x8a3   :  { %v1937_v29 = vpop.f32.mrb[32].mxu1  ;;  %v1978_v7 = vpop.f32.mrb[36].mxu0 }
 0x8a4   :  { %v1985_v39 = vrot.slane %v1937_v29, 1  ;;  %v1986_v36 = vrot.slane %v1937_v29, 2  ;;  %v1987_v40 = vrot.slane %v1937_v29, 3  ;;  %v1988_v46 = vrot.slane %v1937_v29, 4  ;;  %v1939_v16 = vpop.f32.mrb[33].mxu1  ;;  %v2437_v48 = vpop.f32.mrb[37].mxu0 }
 0x8a5   :  { %v2022_v47 = vrot.slane %v1939_v16, 1  ;;  %v2023_v0 = vrot.slane %v1939_v16, 2  ;;  %v2024_v10 = vrot.slane %v1939_v16, 3  ;;  %v1941_v49 = vpop.f32.mrb[34].mxu1  ;;  %v1981_v32 = vpop.f32.mrb[38].mxu0  ;;  %v2025_v25 = vrot.slane %v1939_v16, 4 }
 0x8a6   :  { %v1993_v20 = vadd.f32 %v1985_v39, %v3106_v42  ;;  %v1994_v37 = vadd.f32 %v1986_v36, %v3110_v45  ;;  %v1995_v14 = vadd.f32 %v1987_v40, %v3115_v57  ;;  %v1996_v52 = vadd.f32 %v1988_v46, %v3123_v5  ;;  %v1942_v22 = vpop.f32.mrb[35].mxu1  ;;  %v2438_v34 = vpop.f32.mrb[39].mxu0 }
 0x8a7   :  { %v2030_v50 = vadd.f32 %v2022_v47, %v3108_v43  ;;  %v2031_v41 = vadd.f32 %v2023_v0, %v3117_v59  ;;  %v2032_v53 = vadd.f32 %v2024_v10, %v3119_v62  ;;  %v2033_v45 = vadd.f32 %v2025_v25, %v3125_v8 }
 0x8a8   :  { %v2323_v9 = vmul.f32 -1.442695, %v1993_v20  ;;  %v2324_v56 = vmul.f32 -1.442695, %v1994_v37  ;;  %v2325_v38 = vmul.f32 -1.442695, %v1995_v14  ;;  %v2058_v19 = vadd.f32 %v3344_v6, %v1978_v7 }
 0x8a9   :  { %v2326_v63 = vmul.f32 -1.442695, %v1996_v52  ;;  %v2327_v42 = vmul.f32 -1.442695, %v2030_v50  ;;  %v2328_v57 = vmul.f32 -1.442695, %v2031_v41 }
 0x8aa   :  { %2739 = vpow2.f32 %v2323_v9  ;;  %v2329_v5 = vmul.f32 -1.442695, %v2032_v53  ;;  %v2330_v11 = vmul.f32 -1.442695, %v2033_v45  ;;  %v2060_v26 = vrot.slane %v2058_v19, 1 }
 0x8ab   :  { %2741 = vpow2.f32 %v2324_v56  ;;  %v2061_v61 = vrot.slane %v2058_v19, 2  ;;  %v2062_v60 = vrot.slane %v2058_v19, 3  ;;  %v2063_v39 = vrot.slane %v2058_v19, 4 }
 0x8ac   :  { %2743 = vpow2.f32 %v2325_v38  ;;  %v2092_v48 = vrot.slane %v3452_v28, 7  ;;  %v2093_v0 = vrot.slane %v3454_v31, 7  ;;  %v2094_v20 = vrot.slane %v3456_v3, 7 }
 0x8ad   :  { %2745 = vpow2.f32 %v2326_v63  ;;  %v2095_v28 = vrot.slane %v3460_v44, 7 }
 0x8ae   :  { %2747 = vpow2.f32 %v2327_v42 }
 0x8af   :  { %2749 = vpow2.f32 %v2328_v57 }
 0x8b0   :  { %2751 = vpow2.f32 %v2329_v5 }
 0x8b1   :  { %2753 = vpow2.f32 %v2330_v11 }
 0x8b4   :  { %v2740_v43 = vpop.eup %2739 }
 0x8b5   :  { %v2742_v13 = vpop.eup %2741  ;;  %v2009_v12 = vadd.f32 1.0, %v2740_v43 }
 0x8b6   :  { %v2744_v59 = vpop.eup %2743  ;;  %v2010_v23 = vadd.f32 1.0, %v2742_v13 }
 0x8b7   :  { %v2746_v62 = vpop.eup %2745  ;;  %v2011_v15 = vadd.f32 1.0, %v2744_v59  ;;  %2755 = vrcp.f32 %v2009_v12 }
 0x8b8   :  { %v2748_v17 = vpop.eup %2747  ;;  %v2012_v54 = vadd.f32 1.0, %v2746_v62  ;;  %2757 = vrcp.f32 %v2010_v23 }
 0x8b9   :  { %v2750_v8 = vpop.eup %2749  ;;  %2759 = vrcp.f32 %v2011_v15  ;;  %v2046_v55 = vadd.f32 1.0, %v2748_v17 }
 0x8ba   :  { %v2752_v18 = vpop.eup %2751  ;;  %2761 = vrcp.f32 %v2012_v54  ;;  %v2047_v1 = vadd.f32 1.0, %v2750_v8 }
 0x8bb   :  { %v2754_v51 = vpop.eup %2753  ;;  %v2048_v4 = vadd.f32 1.0, %v2752_v18  ;;  %2763 = vrcp.f32 %v2046_v55 }
 0x8bc   :  { %v2049_v21 = vadd.f32 1.0, %v2754_v51  ;;  %2765 = vrcp.f32 %v2047_v1 }
 0x8bd   :  { %2767 = vrcp.f32 %v2048_v4 }
 0x8be   :  { %2769 = vrcp.f32 %v2049_v21 }
 0x8c1   :  { %v2756_v35 = vpop.eup %2755 }
 0x8c2   :  { %v2758_v27 = vpop.eup %2757  ;;  %v2068_v24 = vmul.f32 %v2756_v35, %v2060_v26 }
 0x8c3   :  { %v2760_v29 = vpop.eup %2759  ;;  %v2069_v36 = vmul.f32 %v2758_v27, %v2061_v61 }
 0x8c4   :  { %v2762_v40 = vpop.eup %2761  ;;  %v2070_v46 = vmul.f32 %v2760_v29, %v2062_v60  ;;  %v2072_v16 = vadd.f32 %v2068_v24, %v3139_v58  ;;  %v2334_v60 = vld [vmem:[#allocation6] ss:$0 sm:$0xff] }
 0x8c5   :  { %v2764_v6 = vpop.eup %2763  ;;  %v2071_v7 = vmul.f32 %v2762_v40, %v2063_v39  ;;  %v2073_v47 = vadd.f32 %v2069_v36, %v3142_v2  ;;  %v2332_v40 = vld [vmem:[#allocation7] ss:$0 sm:$0xff] }
 0x8c6   :  { %v2766_v10 = vpop.eup %2765  ;;  %v2074_v49 = vadd.f32 %v2070_v46, %v3147_v33  ;;  %2771 = vtanh.f32 %v2072_v16  ;;  %v2100_v32 = vmul.f32 %v2764_v6, %v2092_v48  ;;  %v2080_v31 = vsub.f32 1.0, %v2764_v6  ;;  %v2182_v46 = vpop.permute.xlu1 %2181  ;;  %v2333_v6 = vld [vmem:[%s3527_s7] ss:$0 sm:$0xff] }
 0x8c7   :  { %v2768_v37 = vpop.eup %2767  ;;  %v2075_v14 = vadd.f32 %v2071_v7, %v3150_v30  ;;  %2773 = vtanh.f32 %v2073_v47  ;;  %v2101_v58 = vmul.f32 %v2766_v10, %v2093_v0  ;;  %v2081_v9 = vsub.f32 1.0, %v2766_v10 }
 0x8c8   :  { %v2770_v52 = vpop.eup %2769  ;;  %2775 = vtanh.f32 %v2074_v49  ;;  %v2102_v22 = vmul.f32 %v2768_v37, %v2094_v20  ;;  %v2082_v56 = vsub.f32 1.0, %v2768_v37  ;;  %v2190_v16 = vmul.f32 %v2332_v40, %v2182_v46 }
 0x8c9   :  { %2777 = vtanh.f32 %v2075_v14  ;;  %v2103_v2 = vmul.f32 %v2770_v52, %v2095_v28  ;;  %v2083_v3 = vsub.f32 1.0, %v2770_v52 }
 0x8d0   :  { %v2772_v34 = vpop.eup %2771 }
 0x8d1   :  { %v2774_v33 = vpop.eup %2773  ;;  %v2084_v38 = vmul.f32 %v2772_v34, %v2080_v31 }
 0x8d2   :  { %v2776_v50 = vpop.eup %2775  ;;  %v2085_v63 = vmul.f32 %v2774_v33, %v2081_v9 }
 0x8d3   :  { %v2778_v25 = vpop.eup %2777  ;;  %v2086_v30 = vmul.f32 %v2776_v50, %v2082_v56  ;;  %v2104_v41 = vadd.f32 %v2100_v32, %v2084_v38 }
 0x8d4   :  { %v2087_v53 = vmul.f32 %v2778_v25, %v2083_v3  ;;  %v2105_v42 = vadd.f32 %v2101_v58, %v2085_v63 }
 0x8d5   :  { %v2106_v44 = vadd.f32 %v2102_v22, %v2086_v30  ;;  %v2108_v45 = vpack.c.bf16 %v2104_v41, %v2104_v41 }
 0x8d6   :  { %v2107_v57 = vadd.f32 %v2103_v2, %v2087_v53  ;;  %v2109_v5 = vpack.c.bf16 %v2105_v42, %v2105_v42 }
 0x8d7   :  { %v2218_v11 = vrot.slane %v2106_v44, 7  ;;  %v2110_v43 = vpack.c.bf16 %v2106_v44, %v2106_v44  ;;  %v2122_v13 = vunpack.c.l.b16 %v2108_v45 }
 0x8d8   :  { %v2111_v12 = vpack.c.bf16 %v2107_v57, %v2107_v57  ;;  %v2219_v59 = vrot.slane %v2107_v57, 6  ;;  %v2123_v23 = vunpack.c.l.b16 %v2109_v5 }
 0x8d9   :  { %v2124_v62 = vunpack.c.l.b16 %v2110_v43  ;;  %v2126_v15 = vrot.slane %v2122_v13, 7 }
 0x8da   :  { %v2125_v17 = vunpack.c.l.b16 %v2111_v12  ;;  %v2220_v54 = vsel %vm535_vm3, %v2219_v59, %v2218_v11  ;;  %v2127_v8 = vrot.slane %v2123_v23, 6 }
 0x8db   :  { %2221 = vrot.lane.b32.xlu1 %v2220_v54, %s2881_s1  ;;  %v2129_v55 = vrot.slane %v2124_v62, 5 }
 0x8dc   :  { %v2131_v18 = vrot.slane %v2125_v17, 4  ;;  %v2128_v1 = vsel %vm535_vm3, %v2127_v8, %v2126_v15 }
 0x8dd   :  { %v2130_v51 = vsel %vm538_vm4, %v2129_v55, %v2128_v1 }
 0x8de   :  { %v2132_v4 = vsel %vm541_vm5, %v2131_v18, %v2130_v51 }
 0x8df   :  { %v2133_v19 = vpack.c.b16 %v2132_v4, %v2132_v4 }
 0x8e1   :  { %2444 = vmatmul.mubr.msk.bf16.vlgmr.msra.gmra.mrb[36].mxu1 %vm328_vm6, %v2133_v19 }
 0x94d   :  { %v2222_v47 = vpop.permute.xlu1 %2221 }
 0x9b4   :  { %v2171_v21 = vpop.f32.mrb[36].mxu1 }
 0x9b5   :  { %v2445_v26 = vpop.f32.mrb[37].mxu1  ;;  %v2201_v35 = vrot.slane %v2171_v21, 2  ;;  %v2191_v48 = vadd.f32 %v2190_v16, %v2171_v21 }
 0x9b6   :  { %v2174_v61 = vpop.f32.mrb[38].mxu1 }
 0x9b7   :  { %2202 = vrot.lane.b32.xlu0 %v2201_v35, %s2882_s6  ;;  %v2446_v27 = vpop.f32.mrb[39].mxu1  ;;  %v2199_v7 = vadd.f32 %v2333_v6, %v2191_v48 }
 0x9b9   :  { %v2228_v10 = vsel %vm328_vm6, %v2199_v7, %v2222_v47 }
 0x9bb   :  { %2212 = vrot.lane.b32.xlu0 %v2334_v60, %s2881_s1 }
 0xa29   :  { %v2203_v24 = vpop.permute.xlu0 %2202 }
 0xa2a   :  { %v2205_v29 = vadd.f32 %v2203_v24, %v2171_v21 }
 0xa2d   :  { %v2213_v39 = vpop.permute.xlu0 %2212 }
 0xa2e   :  { %v2215_v36 = vadd.f32 %v2213_v39, %v2205_v29 }
 0xa30   :  { %2225 = vrot.lane.b32.xlu0 %v2215_v36, %s2881_s1 }
 0xaa2   :  { %v2226_v0 = vpop.permute.xlu0 %2225 }
 0xaa3   :  { %v2230_v49 = vsel %vm2229_vm7, %v2228_v10, %v2226_v0 }
 0xaa4   :  { %v2232_v32 = vsel %vm2231_vm8, %v2230_v49, 0.0 }
 0xaa5   :  { %2233 = vst [vmem:[%s3530_s10] sm:$0x3] %v2232_v32 }
 0xaa6   :  { %2238 = vsyncpa [#allocation3], 1 }
 0xaa7   :  { %2239 = vsyncpa [#allocation5], 1 }
 0xaa8   :  { %2240 = vsyncpa [#allocation8], 1 }

</bundles_post_ra>
